<compile_context>
chip_gen: v5e
topology: v5e:2x2
jax: 0.10.0
libtpu: 0.0.40
codegen_flags: <defaults>
</compile_context>

<pallas_src>
import functools
import math

import jax
import jax.numpy as jnp
from jax import lax
from jax.experimental import pallas as pl
from jax.experimental.pallas import tpu as pltpu


# ----------------------------- Pallas kernel ---------------------------------
def _segm_kernel(x_ref, w1_ref, bc_ref, mask_ref, wt_ref, bt_ref, *rest,
                 nb, H, W, PAD, apply_sigmoid):
    o_refs = rest[:nb]
    xpad_ref = rest[nb]

    HW = H * W
    Cin = x_ref.shape[1]
    Cmid = wt_ref.shape[2]

    # Zero only the halo lanes (aligned, tiny) and write the interior (aligned store).
    # The halo must stay zero for the whole step: taps read at most W+1 <= PAD lanes
    # into it on either side.
    zeros_pad = jnp.zeros((Cin, PAD), jnp.float32)
    xpad_ref[:, pl.ds(0, PAD)] = zeros_pad
    xpad_ref[:, pl.ds(PAD + HW, PAD)] = zeros_pad
    xpad_ref[:, pl.ds(PAD, HW)] = x_ref[0].astype(jnp.float32)

    # Constant border masks (1, H*W), DMA'd once: rows = [top, bottom, left, right].
    masks = mask_ref[...]
    m_top, m_bot = masks[0:1, :], masks[1:2, :]
    m_left, m_right = masks[2:3, :], masks[3:4, :]

    # BN1-shift + BN2-shift field: interior constant + edge/corner fixup (no mask matmul).
    b0 = bc_ref[:, 0:1]        # sum over all 9 taps of the BN1-shift term, + BN2 shift
    topc = bc_ref[:, 1:2]      # taps with dy = -1
    botc = bc_ref[:, 2:3]      # taps with dy = +1
    leftc = bc_ref[:, 3:4]     # taps with dx = -1
    rightc = bc_ref[:, 4:5]    # taps with dx = +1
    c_tl, c_tr = bc_ref[:, 5:6], bc_ref[:, 6:7]
    c_bl, c_br = bc_ref[:, 7:8], bc_ref[:, 8:9]
    edge = (topc * m_top + botc * m_bot + leftc * m_left + rightc * m_right
            - c_tl * (m_top * m_left) - c_tr * (m_top * m_right)
            - c_bl * (m_bot * m_left) - c_br * (m_bot * m_right))
    pre = b0 - edge                                            # (Ctot, H*W)

    # Conv2d 3x3 (padding=1, bias=False) with BN1/BN2 scales folded into the weight:
    # 9 shifted matmuls, weights on the LHS, lane-dense RHS windows of the halo scratch.
    for t in range(9):
        sy, sx = t // 3 - 1, t % 3 - 1
        win = xpad_ref[:, pl.ds(PAD + sy * W + sx, HW)]        # (Cin, H*W)
        if sx == -1:                                           # zero the row-wrapped lanes
            win = win * (1.0 - m_left)
        elif sx == 1:
            win = win * (1.0 - m_right)
        pre = pre + jnp.dot(w1_ref[t], win, preferred_element_type=jnp.float32)

    y = jnp.maximum(pre, 0.0)                                  # (Ctot, H*W), post BN2+ReLU

    # ConvTranspose2d(kernel=4, stride=4): one matmul per branch (no block-diagonal zeros),
    # rows ordered (class, ky, kx); separate output per branch; optional fused sigmoid.
    for b in range(nb):
        yb = y[b * Cmid:(b + 1) * Cmid, :]
        z = jnp.dot(wt_ref[b], yb, preferred_element_type=jnp.float32) + bt_ref[b]
        if apply_sigmoid:
            z = jax.nn.sigmoid(z)
        o_refs[b][0] = z


def _border_masks(H, W):
    """(4, H*W) f32 constant: rows = [h==0, h==H-1, w==0, w==W-1] over flattened pixels."""
    p = jnp.arange(H * W)
    h = p // W
    w = p % W
    return jnp.stack([(h == 0), (h == H - 1), (w == 0), (w == W - 1)]).astype(jnp.float32)


def _vmem_limit_bytes():
    # Raise the default scoped-VMEM cap; leave headroom on every generation.
    try:
        cap = int(pltpu.get_tpu_info().vmem_capacity_bytes)
    except Exception:
        cap = 128 * 1024 * 1024
    return min(cap * 3 // 4, 100 * 1024 * 1024)


def _run_segm(x_flat, packed, H, W, apply_sigmoid):
    w1, bc, wt, bt = packed
    N, Cin, HW = x_flat.shape
    nb, Kout, Cmid = wt.shape            # Kout = 16 * num_classes
    Ctot = w1.shape[1]                   # nb * (Cin // 4)
    PAD = ((W + 1 + 127) // 128) * 128   # aligned halo, >= W+1 lanes on each side
    masks = _border_masks(H, W)

    kernel = functools.partial(_segm_kernel, nb=nb, H=H, W=W, PAD=PAD,
                               apply_sigmoid=apply_sigmoid)
    return pl.pallas_call(
        kernel,
        out_shape=[jax.ShapeDtypeStruct((N, Kout, HW), jnp.float32)] * nb,
        grid=(N,),
        in_specs=[
            pl.BlockSpec((1, Cin, HW), lambda n: (n, 0, 0)),
            pl.BlockSpec((9, Ctot, Cin), lambda n: (0, 0, 0)),
            pl.BlockSpec((Ctot, 9), lambda n: (0, 0)),
            pl.BlockSpec((4, HW), lambda n: (0, 0)),
            pl.BlockSpec((nb, Kout, Cmid), lambda n: (0, 0, 0)),
            pl.BlockSpec((nb, Kout, 1), lambda n: (0, 0, 0)),
        ],
        out_specs=[pl.BlockSpec((1, Kout, HW), lambda n: (n, 0, 0))] * nb,
        scratch_shapes=[pltpu.VMEM((Cin, HW + 2 * PAD), jnp.float32)],
        compiler_params=pltpu.CompilerParams(
            dimension_semantics=("parallel",),
            vmem_limit_bytes=_vmem_limit_bytes()),
    )(x_flat, w1, bc, masks, wt, bt)


# ------------------------- parameter construction ----------------------------
def _fold_bn(gamma, beta, mean, var, eps=1e-5):
    scale = gamma / jnp.sqrt(var + eps)
    shift = beta - mean * scale
    return scale, shift


def make_branch_params(key, in_channels, num_classes):
    """Deterministic synthetic parameters for one Sequential branch (PyTorch layout)."""
    cmid = in_channels // 4
    ks = jax.random.split(key, 11)
    return dict(
        g1=jax.random.uniform(ks[0], (in_channels,), minval=0.5, maxval=1.5),
        be1=jax.random.normal(ks[1], (in_channels,)) * 0.1,
        m1=jax.random.normal(ks[2], (in_channels,)) * 0.1,
        v1=jax.random.uniform(ks[3], (in_channels,), minval=0.5, maxval=1.5),
        # Conv2d(in_channels, cmid, 3, padding=1, bias=False) stored HWIO.
        w1=jax.random.normal(ks[4], (3, 3, in_channels, cmid)) / math.sqrt(9 * in_channels),
        g2=jax.random.uniform(ks[5], (cmid,), minval=0.5, maxval=1.5),
        be2=jax.random.normal(ks[6], (cmid,)) * 0.1,
        m2=jax.random.normal(ks[7], (cmid,)) * 0.1,
        v2=jax.random.uniform(ks[8], (cmid,), minval=0.5, maxval=1.5),
        # ConvTranspose2d(cmid, num_classes, 4, stride=4): weight (cmid, NC, 4, 4), bias (NC,)
        wt=jax.random.normal(ks[9], (cmid, num_classes, 4, 4)) / math.sqrt(cmid * 16),
        bt=jax.random.normal(ks[10], (num_classes,)) * 0.1,
    )


def pack_branches(raws):
    """Fold eval-mode BN into weights; build LHS-layout conv/deconv weights and the
    (Ctot, 9) interior/edge/corner correction table for the BN1 shift."""
    w1_l, bc_l, wt_l, bt_l = [], [], [], []
    for r in raws:
        cin, cmid = r["w1"].shape[2], r["w1"].shape[3]
        nc = r["wt"].shape[1]
        s1, sh1 = _fold_bn(r["g1"], r["be1"], r["m1"], r["v1"])
        s2, sh2 = _fold_bn(r["g2"], r["be2"], r["m2"], r["v2"])
        # BN1 input-channel scale and BN2 output-channel scale folded into the conv weight.
        w1s = r["w1"] * s1[None, None, :, None] * s2[None, None, None, :]   # (3,3,cin,cmid)
        w1_l.append(jnp.transpose(w1s.reshape(9, cin, cmid), (0, 2, 1))
                    .astype(jnp.float32))                                   # (9, cmid, cin)
        # Per-tap BN1-shift contribution (already BN2-scaled), then the 9 correction cols:
        # [interior sum + BN2 shift, top, bottom, left, right, tl, tr, bl, br].
        tap = (jnp.einsum("hwic,i->hwc", r["w1"], sh1) * s2).reshape(9, cmid)
        cols = [tap.sum(0) + sh2,
                tap[0] + tap[1] + tap[2],        # dy = -1
                tap[6] + tap[7] + tap[8],        # dy = +1
                tap[0] + tap[3] + tap[6],        # dx = -1
                tap[2] + tap[5] + tap[8],        # dx = +1
                tap[0], tap[2], tap[6], tap[8]]  # corners tl, tr, bl, br
        bc_l.append(jnp.stack(cols, axis=1).astype(jnp.float32))            # (cmid, 9)
        # Deconv weight in LHS layout, rows ordered (class, ky, kx); bias repeated 16x.
        wt2 = jnp.transpose(r["wt"], (1, 2, 3, 0)).reshape(16 * nc, cmid)
        wt_l.append(wt2.astype(jnp.float32))
        bt_l.append(jnp.repeat(r["bt"], 16).reshape(16 * nc, 1).astype(jnp.float32))

    w1 = jnp.concatenate(w1_l, axis=1)     # (9, nb*cmid, cin)
    bc = jnp.concatenate(bc_l, axis=0)     # (nb*cmid, 9)
    wt = jnp.stack(wt_l, axis=0)           # (nb, 16*nc, cmid)
    bt = jnp.stack(bt_l, axis=0)           # (nb, 16*nc, 1)
    return (w1, bc, wt, bt)


# ------------------------------- forward --------------------------------------
def _depth_to_space(z, H, W, num_classes):
    # (N, 16*NC, H*W) with rows (co, ky, kx) and cols (h, w) -> (N, NC, 4H, 4W)
    N = z.shape[0]
    z = z.reshape(N, num_classes, 4, 4, H, W)
    z = jnp.transpose(z, (0, 1, 4, 2, 5, 3))
    return z.reshape(N, num_classes, 4 * H, 4 * W)


def classifier_segmenter_forward(ft_nchw, raw_1, raw_reflect, infer=False):
    """Matches ClassifierSegmenter.forward (PyTorch NCHW in / NCHW out, eval-mode BN)."""
    N, Cin, H, W = ft_nchw.shape
    NC = raw_1["wt"].shape[1]
    # NCHW consumed directly: (N,C,H,W) -> (N,C,H*W) is a free reshape (no HBM pass).
    x_flat = ft_nchw.reshape(N, Cin, H * W).astype(jnp.float32)

    raws = [raw_1] if infer else [raw_1, raw_reflect]
    packed = pack_branches(raws)
    outs = _run_segm(x_flat, packed, H, W, apply_sigmoid=infer)

    shuffled = [_depth_to_space(o, H, W, NC) for o in outs]
    if infer:
        return shuffled[0]
    return shuffled[0], shuffled[1]


# ---------------- pure-JAX reference (for correctness check only) -------------
def _ref_branch(x_nchw, raw):
    x = jnp.transpose(x_nchw, (0, 2, 3, 1)).astype(jnp.float32)
    s1, sh1 = _fold_bn(raw["g1"], raw["be1"], raw["m1"], raw["v1"])
    s2, sh2 = _fold_bn(raw["g2"], raw["be2"], raw["m2"], raw["v2"])
    xb = x * s1 + sh1
    conv = lax.conv_general_dilated(xb, raw["w1"], (1, 1), "SAME",
                                    dimension_numbers=("NHWC", "HWIO", "NHWC"))
    y = jnp.maximum(conv * s2 + sh2, 0.0)
    z = jnp.einsum("nhwc,cokl->nhkwlo", y, raw["wt"])          # (N,H,4,W,4,NC)
    N, H, _, W, _, NC = z.shape
    z = z.reshape(N, 4 * H, 4 * W, NC) + raw["bt"]
    return jnp.transpose(z, (0, 3, 1, 2))


if __name__ == "__main__":
    key = jax.random.PRNGKey(0)
    k_in, k1, k2 = jax.random.split(key, 3)

    N, Cin, Hs, Ws = 2, 16, 16, 16     # in_channels divisible by 4; H*W multiple of 128
    NC = 2                             # num_classes

    ft = jax.random.normal(k_in, (N, Cin, Hs, Ws), dtype=jnp.float32)
    raw1 = make_branch_params(k1, Cin, NC)
    rawr = make_branch_params(k2, Cin, NC)

    # training path: both branches, no sigmoid
    probas, reflects = classifier_segmenter_forward(ft, raw1, rawr, infer=False)
    jax.block_until_ready((probas, reflects))
    assert probas.shape == (N, NC, 4 * Hs, 4 * Ws)
    assert reflects.shape == (N, NC, 4 * Hs, 4 * Ws)

    ref_p = _ref_branch(ft, raw1)
    ref_r = _ref_branch(ft, rawr)
    assert jnp.allclose(probas, ref_p, atol=1e-4, rtol=1e-4)
    assert jnp.allclose(reflects, ref_r, atol=1e-4, rtol=1e-4)

    # infer path: single branch, sigmoid fused into the kernel epilogue
    sig = classifier_segmenter_forward(ft, raw1, rawr, infer=True)
    jax.block_until_ready(sig)
    assert sig.shape == (N, NC, 4 * Hs, 4 * Ws)
    assert jnp.allclose(sig, jax.nn.sigmoid(ref_p), atol=1e-4, rtol=1e-4)

    print("KERNEL_OK")
</pallas_src>

<mosaic_0001>
module attributes {stable_mosaic.version = 11 : i64} {
  func.func @_segm_kernel(%arg0: i32, %arg1: memref<1x16x256xf32, #tpu.memory_space<vmem>>, %arg2: memref<9x8x16xf32, #tpu.memory_space<vmem>>, %arg3: memref<8x9xf32, #tpu.memory_space<vmem>>, %arg4: memref<4x256xf32, #tpu.memory_space<vmem>>, %arg5: memref<2x32x4xf32, #tpu.memory_space<vmem>>, %arg6: memref<2x32x1xf32, #tpu.memory_space<vmem>>, %arg7: memref<1x32x256xf32, #tpu.memory_space<vmem>>, %arg8: memref<1x32x256xf32, #tpu.memory_space<vmem>>, %arg9: memref<16x512xf32, #tpu.memory_space<vmem>>) attributes {dimension_semantics = [#tpu.dimension_semantics<parallel>], iteration_bounds = array<i64: 2>, scalar_prefetch = 0 : i64, scratch_operands = 1 : i64, tpu.core_type = #tpu.core_type<tc>, window_params = [{transform_indices = @transform_0, window_bounds = array<i64: 1, 16, 256>}, {pipeline_mode = #tpu.pipeline_mode<synchronous>, transform_indices = @transform_1, window_bounds = array<i64: 9, 8, 16>}, {pipeline_mode = #tpu.pipeline_mode<synchronous>, transform_indices = @transform_2, window_bounds = array<i64: 8, 9>}, {pipeline_mode = #tpu.pipeline_mode<synchronous>, transform_indices = @transform_3, window_bounds = array<i64: 4, 256>}, {pipeline_mode = #tpu.pipeline_mode<synchronous>, transform_indices = @transform_4, window_bounds = array<i64: 2, 32, 4>}, {pipeline_mode = #tpu.pipeline_mode<synchronous>, transform_indices = @transform_5, window_bounds = array<i64: 2, 32, 1>}, {transform_indices = @transform_6, window_bounds = array<i64: 1, 32, 256>}, {transform_indices = @transform_7, window_bounds = array<i64: 1, 32, 256>}]} {
    %cst = arith.constant 0.000000e+00 : f32
    %0 = vector.broadcast %cst : f32 to vector<16x128xf32>
    %c0 = arith.constant 0 : index
    %c0_0 = arith.constant 0 : index
    %1 = vector.load %arg9[%c0, %c0_0] : memref<16x512xf32, #tpu.memory_space<vmem>>, vector<16x128xf32>
    tpu.vector_store %arg9[%c0, %c0_0], %0 {strides = array<i32>} : memref<16x512xf32, #tpu.memory_space<vmem>>, vector<16x128xf32>,
    %c0_1 = arith.constant 0 : index
    %c384 = arith.constant 384 : index
    %2 = vector.load %arg9[%c0_1, %c384] : memref<16x512xf32, #tpu.memory_space<vmem>>, vector<16x128xf32>
    tpu.vector_store %arg9[%c0_1, %c384], %0 {strides = array<i32>} : memref<16x512xf32, #tpu.memory_space<vmem>>, vector<16x128xf32>,
    %c0_2 = arith.constant 0 : index
    %c0_3 = arith.constant 0 : index
    %c0_4 = arith.constant 0 : index
    %3 = vector.load %arg1[%c0_2, %c0_3, %c0_4] : memref<1x16x256xf32, #tpu.memory_space<vmem>>, vector<1x16x256xf32>
    %4 = vector.shape_cast %3 : vector<1x16x256xf32> to vector<16x256xf32>
    %c0_5 = arith.constant 0 : index
    %c128 = arith.constant 128 : index
    %5 = vector.load %arg9[%c0_5, %c128] : memref<16x512xf32, #tpu.memory_space<vmem>>, vector<16x256xf32>
    tpu.vector_store %arg9[%c0_5, %c128], %4 {strides = array<i32>} : memref<16x512xf32, #tpu.memory_space<vmem>>, vector<16x256xf32>,
    %c0_6 = arith.constant 0 : index
    %c0_7 = arith.constant 0 : index
    %6 = vector.load %arg4[%c0_6, %c0_7] : memref<4x256xf32, #tpu.memory_space<vmem>>, vector<4x256xf32>
    %7 = vector.extract_strided_slice %6 {offsets = [0, 0], sizes = [1, 256], strides = [1, 1]} : vector<4x256xf32> to vector<1x256xf32>
    %8 = vector.extract_strided_slice %6 {offsets = [1, 0], sizes = [1, 256], strides = [1, 1]} : vector<4x256xf32> to vector<1x256xf32>
    %9 = vector.extract_strided_slice %6 {offsets = [2, 0], sizes = [1, 256], strides = [1, 1]} : vector<4x256xf32> to vector<1x256xf32>
    %10 = vector.extract_strided_slice %6 {offsets = [3, 0], sizes = [1, 256], strides = [1, 1]} : vector<4x256xf32> to vector<1x256xf32>
    %c0_8 = arith.constant 0 : index
    %c0_9 = arith.constant 0 : index
    %11 = vector.load %arg3[%c0_8, %c0_9] : memref<8x9xf32, #tpu.memory_space<vmem>>, vector<8x1xf32>
    %c0_10 = arith.constant 0 : index
    %c1 = arith.constant 1 : index
    %12 = vector.load %arg3[%c0_10, %c1] : memref<8x9xf32, #tpu.memory_space<vmem>>, vector<8x1xf32>
    %c0_11 = arith.constant 0 : index
    %c2 = arith.constant 2 : index
    %13 = vector.load %arg3[%c0_11, %c2] : memref<8x9xf32, #tpu.memory_space<vmem>>, vector<8x1xf32>
    %c0_12 = arith.constant 0 : index
    %c3 = arith.constant 3 : index
    %14 = vector.load %arg3[%c0_12, %c3] : memref<8x9xf32, #tpu.memory_space<vmem>>, vector<8x1xf32>
    %c0_13 = arith.constant 0 : index
    %c4 = arith.constant 4 : index
    %15 = vector.load %arg3[%c0_13, %c4] : memref<8x9xf32, #tpu.memory_space<vmem>>, vector<8x1xf32>
    %c0_14 = arith.constant 0 : index
    %c5 = arith.constant 5 : index
    %16 = vector.load %arg3[%c0_14, %c5] : memref<8x9xf32, #tpu.memory_space<vmem>>, vector<8x1xf32>
    %c0_15 = arith.constant 0 : index
    %c6 = arith.constant 6 : index
    %17 = vector.load %arg3[%c0_15, %c6] : memref<8x9xf32, #tpu.memory_space<vmem>>, vector<8x1xf32>
    %c0_16 = arith.constant 0 : index
    %c7 = arith.constant 7 : index
    %18 = vector.load %arg3[%c0_16, %c7] : memref<8x9xf32, #tpu.memory_space<vmem>>, vector<8x1xf32>
    %c0_17 = arith.constant 0 : index
    %c8 = arith.constant 8 : index
    %19 = vector.load %arg3[%c0_17, %c8] : memref<8x9xf32, #tpu.memory_space<vmem>>, vector<8x1xf32>
    %20 = vector.broadcast %12 : vector<8x1xf32> to vector<8x256xf32>
    %21 = vector.broadcast %7 : vector<1x256xf32> to vector<8x256xf32>
    %22 = arith.mulf %20, %21 : vector<8x256xf32>
    %23 = vector.broadcast %13 : vector<8x1xf32> to vector<8x256xf32>
    %24 = vector.broadcast %8 : vector<1x256xf32> to vector<8x256xf32>
    %25 = arith.mulf %23, %24 : vector<8x256xf32>
    %26 = arith.addf %22, %25 : vector<8x256xf32>
    %27 = vector.broadcast %14 : vector<8x1xf32> to vector<8x256xf32>
    %28 = vector.broadcast %9 : vector<1x256xf32> to vector<8x256xf32>
    %29 = arith.mulf %27, %28 : vector<8x256xf32>
    %30 = arith.addf %26, %29 : vector<8x256xf32>
    %31 = vector.broadcast %15 : vector<8x1xf32> to vector<8x256xf32>
    %32 = vector.broadcast %10 : vector<1x256xf32> to vector<8x256xf32>
    %33 = arith.mulf %31, %32 : vector<8x256xf32>
    %34 = arith.addf %30, %33 : vector<8x256xf32>
    %35 = arith.mulf %7, %9 : vector<1x256xf32>
    %36 = vector.broadcast %16 : vector<8x1xf32> to vector<8x256xf32>
    %37 = vector.broadcast %35 : vector<1x256xf32> to vector<8x256xf32>
    %38 = arith.mulf %36, %37 : vector<8x256xf32>
    %39 = arith.subf %34, %38 : vector<8x256xf32>
    %40 = arith.mulf %7, %10 : vector<1x256xf32>
    %41 = vector.broadcast %17 : vector<8x1xf32> to vector<8x256xf32>
    %42 = vector.broadcast %40 : vector<1x256xf32> to vector<8x256xf32>
    %43 = arith.mulf %41, %42 : vector<8x256xf32>
    %44 = arith.subf %39, %43 : vector<8x256xf32>
    %45 = arith.mulf %8, %9 : vector<1x256xf32>
    %46 = vector.broadcast %18 : vector<8x1xf32> to vector<8x256xf32>
    %47 = vector.broadcast %45 : vector<1x256xf32> to vector<8x256xf32>
    %48 = arith.mulf %46, %47 : vector<8x256xf32>
    %49 = arith.subf %44, %48 : vector<8x256xf32>
    %50 = arith.mulf %8, %10 : vector<1x256xf32>
    %51 = vector.broadcast %19 : vector<8x1xf32> to vector<8x256xf32>
    %52 = vector.broadcast %50 : vector<1x256xf32> to vector<8x256xf32>
    %53 = arith.mulf %51, %52 : vector<8x256xf32>
    %54 = arith.subf %49, %53 : vector<8x256xf32>
    %55 = vector.broadcast %11 : vector<8x1xf32> to vector<8x256xf32>
    %56 = arith.subf %55, %54 : vector<8x256xf32>
    %c0_18 = arith.constant 0 : index
    %c111 = arith.constant 111 : index
    %57 = vector.load %arg9[%c0_18, %c111] : memref<16x512xf32, #tpu.memory_space<vmem>>, vector<16x256xf32>
    %cst_19 = arith.constant 1.000000e+00 : f32
    %58 = vector.broadcast %cst_19 : f32 to vector<1x256xf32>
    %59 = arith.subf %58, %9 : vector<1x256xf32>
    %60 = vector.broadcast %59 : vector<1x256xf32> to vector<16x256xf32>
    %61 = arith.mulf %57, %60 : vector<16x256xf32>
    %c0_20 = arith.constant 0 : index
    %c0_21 = arith.constant 0 : index
    %c0_22 = arith.constant 0 : index
    %62 = vector.load %arg2[%c0_20, %c0_21, %c0_22] : memref<9x8x16xf32, #tpu.memory_space<vmem>>, vector<1x8x16xf32>
    %63 = vector.shape_cast %62 : vector<1x8x16xf32> to vector<8x16xf32>
    %cst_23 = arith.constant dense<0.000000e+00> : vector<8x256xf32>
    %64 = tpu.matmul %63, %61, %cst_23 {dimension_numbers = #tpu.dot_dimension_numbers<[1], [0], [0], [1], [0, 0, 1, 1], [], []>} : vector<8x16xf32>, vector<16x256xf32>, vector<8x256xf32> -> vector<8x256xf32>
    %65 = arith.addf %56, %64 : vector<8x256xf32>
    %c0_24 = arith.constant 0 : index
    %c112 = arith.constant 112 : index
    %66 = vector.load %arg9[%c0_24, %c112] : memref<16x512xf32, #tpu.memory_space<vmem>>, vector<16x256xf32>
    %c1_25 = arith.constant 1 : index
    %c0_26 = arith.constant 0 : index
    %c0_27 = arith.constant 0 : index
    %67 = vector.load %arg2[%c1_25, %c0_26, %c0_27] : memref<9x8x16xf32, #tpu.memory_space<vmem>>, vector<1x8x16xf32>
    %68 = vector.shape_cast %67 : vector<1x8x16xf32> to vector<8x16xf32>
    %cst_28 = arith.constant dense<0.000000e+00> : vector<8x256xf32>
    %69 = tpu.matmul %68, %66, %cst_28 {dimension_numbers = #tpu.dot_dimension_numbers<[1], [0], [0], [1], [0, 0, 1, 1], [], []>} : vector<8x16xf32>, vector<16x256xf32>, vector<8x256xf32> -> vector<8x256xf32>
    %70 = arith.addf %65, %69 : vector<8x256xf32>
    %c0_29 = arith.constant 0 : index
    %c113 = arith.constant 113 : index
    %71 = vector.load %arg9[%c0_29, %c113] : memref<16x512xf32, #tpu.memory_space<vmem>>, vector<16x256xf32>
    %cst_30 = arith.constant 1.000000e+00 : f32
    %72 = vector.broadcast %cst_30 : f32 to vector<1x256xf32>
    %73 = arith.subf %72, %10 : vector<1x256xf32>
    %74 = vector.broadcast %73 : vector<1x256xf32> to vector<16x256xf32>
    %75 = arith.mulf %71, %74 : vector<16x256xf32>
    %c2_31 = arith.constant 2 : index
    %c0_32 = arith.constant 0 : index
    %c0_33 = arith.constant 0 : index
    %76 = vector.load %arg2[%c2_31, %c0_32, %c0_33] : memref<9x8x16xf32, #tpu.memory_space<vmem>>, vector<1x8x16xf32>
    %77 = vector.shape_cast %76 : vector<1x8x16xf32> to vector<8x16xf32>
    %cst_34 = arith.constant dense<0.000000e+00> : vector<8x256xf32>
    %78 = tpu.matmul %77, %75, %cst_34 {dimension_numbers = #tpu.dot_dimension_numbers<[1], [0], [0], [1], [0, 0, 1, 1], [], []>} : vector<8x16xf32>, vector<16x256xf32>, vector<8x256xf32> -> vector<8x256xf32>
    %79 = arith.addf %70, %78 : vector<8x256xf32>
    %c0_35 = arith.constant 0 : index
    %c127 = arith.constant 127 : index
    %80 = vector.load %arg9[%c0_35, %c127] : memref<16x512xf32, #tpu.memory_space<vmem>>, vector<16x256xf32>
    %cst_36 = arith.constant 1.000000e+00 : f32
    %81 = vector.broadcast %cst_36 : f32 to vector<1x256xf32>
    %82 = arith.subf %81, %9 : vector<1x256xf32>
    %83 = vector.broadcast %82 : vector<1x256xf32> to vector<16x256xf32>
    %84 = arith.mulf %80, %83 : vector<16x256xf32>
    %c3_37 = arith.constant 3 : index
    %c0_38 = arith.constant 0 : index
    %c0_39 = arith.constant 0 : index
    %85 = vector.load %arg2[%c3_37, %c0_38, %c0_39] : memref<9x8x16xf32, #tpu.memory_space<vmem>>, vector<1x8x16xf32>
    %86 = vector.shape_cast %85 : vector<1x8x16xf32> to vector<8x16xf32>
    %cst_40 = arith.constant dense<0.000000e+00> : vector<8x256xf32>
    %87 = tpu.matmul %86, %84, %cst_40 {dimension_numbers = #tpu.dot_dimension_numbers<[1], [0], [0], [1], [0, 0, 1, 1], [], []>} : vector<8x16xf32>, vector<16x256xf32>, vector<8x256xf32> -> vector<8x256xf32>
    %88 = arith.addf %79, %87 : vector<8x256xf32>
    %c0_41 = arith.constant 0 : index
    %c128_42 = arith.constant 128 : index
    %89 = vector.load %arg9[%c0_41, %c128_42] : memref<16x512xf32, #tpu.memory_space<vmem>>, vector<16x256xf32>
    %c4_43 = arith.constant 4 : index
    %c0_44 = arith.constant 0 : index
    %c0_45 = arith.constant 0 : index
    %90 = vector.load %arg2[%c4_43, %c0_44, %c0_45] : memref<9x8x16xf32, #tpu.memory_space<vmem>>, vector<1x8x16xf32>
    %91 = vector.shape_cast %90 : vector<1x8x16xf32> to vector<8x16xf32>
    %cst_46 = arith.constant dense<0.000000e+00> : vector<8x256xf32>
    %92 = tpu.matmul %91, %89, %cst_46 {dimension_numbers = #tpu.dot_dimension_numbers<[1], [0], [0], [1], [0, 0, 1, 1], [], []>} : vector<8x16xf32>, vector<16x256xf32>, vector<8x256xf32> -> vector<8x256xf32>
    %93 = arith.addf %88, %92 : vector<8x256xf32>
    %c0_47 = arith.constant 0 : index
    %c129 = arith.constant 129 : index
    %94 = vector.load %arg9[%c0_47, %c129] : memref<16x512xf32, #tpu.memory_space<vmem>>, vector<16x256xf32>
    %cst_48 = arith.constant 1.000000e+00 : f32
    %95 = vector.broadcast %cst_48 : f32 to vector<1x256xf32>
    %96 = arith.subf %95, %10 : vector<1x256xf32>
    %97 = vector.broadcast %96 : vector<1x256xf32> to vector<16x256xf32>
    %98 = arith.mulf %94, %97 : vector<16x256xf32>
    %c5_49 = arith.constant 5 : index
    %c0_50 = arith.constant 0 : index
    %c0_51 = arith.constant 0 : index
    %99 = vector.load %arg2[%c5_49, %c0_50, %c0_51] : memref<9x8x16xf32, #tpu.memory_space<vmem>>, vector<1x8x16xf32>
    %100 = vector.shape_cast %99 : vector<1x8x16xf32> to vector<8x16xf32>
    %cst_52 = arith.constant dense<0.000000e+00> : vector<8x256xf32>
    %101 = tpu.matmul %100, %98, %cst_52 {dimension_numbers = #tpu.dot_dimension_numbers<[1], [0], [0], [1], [0, 0, 1, 1], [], []>} : vector<8x16xf32>, vector<16x256xf32>, vector<8x256xf32> -> vector<8x256xf32>
    %102 = arith.addf %93, %101 : vector<8x256xf32>
    %c0_53 = arith.constant 0 : index
    %c143 = arith.constant 143 : index
    %103 = vector.load %arg9[%c0_53, %c143] : memref<16x512xf32, #tpu.memory_space<vmem>>, vector<16x256xf32>
    %cst_54 = arith.constant 1.000000e+00 : f32
    %104 = vector.broadcast %cst_54 : f32 to vector<1x256xf32>
    %105 = arith.subf %104, %9 : vector<1x256xf32>
    %106 = vector.broadcast %105 : vector<1x256xf32> to vector<16x256xf32>
    %107 = arith.mulf %103, %106 : vector<16x256xf32>
    %c6_55 = arith.constant 6 : index
    %c0_56 = arith.constant 0 : index
    %c0_57 = arith.constant 0 : index
    %108 = vector.load %arg2[%c6_55, %c0_56, %c0_57] : memref<9x8x16xf32, #tpu.memory_space<vmem>>, vector<1x8x16xf32>
    %109 = vector.shape_cast %108 : vector<1x8x16xf32> to vector<8x16xf32>
    %cst_58 = arith.constant dense<0.000000e+00> : vector<8x256xf32>
    %110 = tpu.matmul %109, %107, %cst_58 {dimension_numbers = #tpu.dot_dimension_numbers<[1], [0], [0], [1], [0, 0, 1, 1], [], []>} : vector<8x16xf32>, vector<16x256xf32>, vector<8x256xf32> -> vector<8x256xf32>
    %111 = arith.addf %102, %110 : vector<8x256xf32>
    %c0_59 = arith.constant 0 : index
    %c144 = arith.constant 144 : index
    %112 = vector.load %arg9[%c0_59, %c144] : memref<16x512xf32, #tpu.memory_space<vmem>>, vector<16x256xf32>
    %c7_60 = arith.constant 7 : index
    %c0_61 = arith.constant 0 : index
    %c0_62 = arith.constant 0 : index
    %113 = vector.load %arg2[%c7_60, %c0_61, %c0_62] : memref<9x8x16xf32, #tpu.memory_space<vmem>>, vector<1x8x16xf32>
    %114 = vector.shape_cast %113 : vector<1x8x16xf32> to vector<8x16xf32>
    %cst_63 = arith.constant dense<0.000000e+00> : vector<8x256xf32>
    %115 = tpu.matmul %114, %112, %cst_63 {dimension_numbers = #tpu.dot_dimension_numbers<[1], [0], [0], [1], [0, 0, 1, 1], [], []>} : vector<8x16xf32>, vector<16x256xf32>, vector<8x256xf32> -> vector<8x256xf32>
    %116 = arith.addf %111, %115 : vector<8x256xf32>
    %c0_64 = arith.constant 0 : index
    %c145 = arith.constant 145 : index
    %117 = vector.load %arg9[%c0_64, %c145] : memref<16x512xf32, #tpu.memory_space<vmem>>, vector<16x256xf32>
    %cst_65 = arith.constant 1.000000e+00 : f32
    %118 = vector.broadcast %cst_65 : f32 to vector<1x256xf32>
    %119 = arith.subf %118, %10 : vector<1x256xf32>
    %120 = vector.broadcast %119 : vector<1x256xf32> to vector<16x256xf32>
    %121 = arith.mulf %117, %120 : vector<16x256xf32>
    %c8_66 = arith.constant 8 : index
    %c0_67 = arith.constant 0 : index
    %c0_68 = arith.constant 0 : index
    %122 = vector.load %arg2[%c8_66, %c0_67, %c0_68] : memref<9x8x16xf32, #tpu.memory_space<vmem>>, vector<1x8x16xf32>
    %123 = vector.shape_cast %122 : vector<1x8x16xf32> to vector<8x16xf32>
    %cst_69 = arith.constant dense<0.000000e+00> : vector<8x256xf32>
    %124 = tpu.matmul %123, %121, %cst_69 {dimension_numbers = #tpu.dot_dimension_numbers<[1], [0], [0], [1], [0, 0, 1, 1], [], []>} : vector<8x16xf32>, vector<16x256xf32>, vector<8x256xf32> -> vector<8x256xf32>
    %125 = arith.addf %116, %124 : vector<8x256xf32>
    %cst_70 = arith.constant 0.000000e+00 : f32
    %126 = vector.broadcast %cst_70 : f32 to vector<8x256xf32>
    %127 = arith.maximumf %125, %126 : vector<8x256xf32>
    %128 = vector.extract_strided_slice %127 {offsets = [0, 0], sizes = [4, 256], strides = [1, 1]} : vector<8x256xf32> to vector<4x256xf32>
    %c0_71 = arith.constant 0 : index
    %c0_72 = arith.constant 0 : index
    %c0_73 = arith.constant 0 : index
    %129 = vector.load %arg5[%c0_71, %c0_72, %c0_73] : memref<2x32x4xf32, #tpu.memory_space<vmem>>, vector<1x32x4xf32>
    %130 = vector.shape_cast %129 : vector<1x32x4xf32> to vector<32x4xf32>
    %cst_74 = arith.constant dense<0.000000e+00> : vector<32x256xf32>
    %131 = tpu.matmul %130, %128, %cst_74 {dimension_numbers = #tpu.dot_dimension_numbers<[1], [0], [0], [1], [0, 0, 1, 1], [], []>} : vector<32x4xf32>, vector<4x256xf32>, vector<32x256xf32> -> vector<32x256xf32>
    %c0_75 = arith.constant 0 : index
    %c0_76 = arith.constant 0 : index
    %c0_77 = arith.constant 0 : index
    %132 = vector.load %arg6[%c0_75, %c0_76, %c0_77] : memref<2x32x1xf32, #tpu.memory_space<vmem>>, vector<1x32x1xf32>
    %133 = vector.shape_cast %132 : vector<1x32x1xf32> to vector<32x1xf32>
    %134 = vector.broadcast %133 : vector<32x1xf32> to vector<32x256xf32>
    %135 = arith.addf %131, %134 : vector<32x256xf32>
    %c0_78 = arith.constant 0 : index
    %c0_79 = arith.constant 0 : index
    %c0_80 = arith.constant 0 : index
    %136 = vector.load %arg7[%c0_78, %c0_79, %c0_80] : memref<1x32x256xf32, #tpu.memory_space<vmem>>, vector<1x32x256xf32>
    %137 = vector.shape_cast %136 : vector<1x32x256xf32> to vector<32x256xf32>
    %138 = vector.shape_cast %135 : vector<32x256xf32> to vector<1x32x256xf32>
    tpu.vector_store %arg7[%c0_78, %c0_79, %c0_80], %138 {strides = array<i32>} : memref<1x32x256xf32, #tpu.memory_space<vmem>>, vector<1x32x256xf32>,
    %139 = vector.extract_strided_slice %127 {offsets = [4, 0], sizes = [4, 256], strides = [1, 1]} : vector<8x256xf32> to vector<4x256xf32>
    %c1_81 = arith.constant 1 : index
    %c0_82 = arith.constant 0 : index
    %c0_83 = arith.constant 0 : index
    %140 = vector.load %arg5[%c1_81, %c0_82, %c0_83] : memref<2x32x4xf32, #tpu.memory_space<vmem>>, vector<1x32x4xf32>
    %141 = vector.shape_cast %140 : vector<1x32x4xf32> to vector<32x4xf32>
    %cst_84 = arith.constant dense<0.000000e+00> : vector<32x256xf32>
    %142 = tpu.matmul %141, %139, %cst_84 {dimension_numbers = #tpu.dot_dimension_numbers<[1], [0], [0], [1], [0, 0, 1, 1], [], []>} : vector<32x4xf32>, vector<4x256xf32>, vector<32x256xf32> -> vector<32x256xf32>
    %c1_85 = arith.constant 1 : index
    %c0_86 = arith.constant 0 : index
    %c0_87 = arith.constant 0 : index
    %143 = vector.load %arg6[%c1_85, %c0_86, %c0_87] : memref<2x32x1xf32, #tpu.memory_space<vmem>>, vector<1x32x1xf32>
    %144 = vector.shape_cast %143 : vector<1x32x1xf32> to vector<32x1xf32>
    %145 = vector.broadcast %144 : vector<32x1xf32> to vector<32x256xf32>
    %146 = arith.addf %142, %145 : vector<32x256xf32>
    %c0_88 = arith.constant 0 : index
    %c0_89 = arith.constant 0 : index
    %c0_90 = arith.constant 0 : index
    %147 = vector.load %arg8[%c0_88, %c0_89, %c0_90] : memref<1x32x256xf32, #tpu.memory_space<vmem>>, vector<1x32x256xf32>
    %148 = vector.shape_cast %147 : vector<1x32x256xf32> to vector<32x256xf32>
    %149 = vector.shape_cast %146 : vector<32x256xf32> to vector<1x32x256xf32>
    tpu.vector_store %arg8[%c0_88, %c0_89, %c0_90], %149 {strides = array<i32>} : memref<1x32x256xf32, #tpu.memory_space<vmem>>, vector<1x32x256xf32>,
    return
  }
  func.func @transform_0(%arg0: i32) -> (i32, i32, i32) {
    %c0_i32 = arith.constant 0 : i32
    %c0_i32_0 = arith.constant 0 : i32
    %c0_i32_1 = arith.constant 0 : i32
    return %arg0, %c0_i32, %c0_i32_0 : i32, i32, i32
  }
  func.func @transform_1(%arg0: i32) -> (i32, i32, i32) {
    %c0_i32 = arith.constant 0 : i32
    %c0_i32_0 = arith.constant 0 : i32
    %c0_i32_1 = arith.constant 0 : i32
    %c0_i32_2 = arith.constant 0 : i32
    return %c0_i32, %c0_i32_0, %c0_i32_1 : i32, i32, i32
  }
  func.func @transform_2(%arg0: i32) -> (i32, i32) {
    %c0_i32 = arith.constant 0 : i32
    %c0_i32_0 = arith.constant 0 : i32
    %c0_i32_1 = arith.constant 0 : i32
    return %c0_i32, %c0_i32_0 : i32, i32
  }
  func.func @transform_3(%arg0: i32) -> (i32, i32) {
    %c0_i32 = arith.constant 0 : i32
    %c0_i32_0 = arith.constant 0 : i32
    %c0_i32_1 = arith.constant 0 : i32
    return %c0_i32, %c0_i32_0 : i32, i32
  }
  func.func @transform_4(%arg0: i32) -> (i32, i32, i32) {
    %c0_i32 = arith.constant 0 : i32
    %c0_i32_0 = arith.constant 0 : i32
    %c0_i32_1 = arith.constant 0 : i32
    %c0_i32_2 = arith.constant 0 : i32
    return %c0_i32, %c0_i32_0, %c0_i32_1 : i32, i32, i32
  }
  func.func @transform_5(%arg0: i32) -> (i32, i32, i32) {
    %c0_i32 = arith.constant 0 : i32
    %c0_i32_0 = arith.constant 0 : i32
    %c0_i32_1 = arith.constant 0 : i32
    %c0_i32_2 = arith.constant 0 : i32
    return %c0_i32, %c0_i32_0, %c0_i32_1 : i32, i32, i32
  }
  func.func @transform_6(%arg0: i32) -> (i32, i32, i32) {
    %c0_i32 = arith.constant 0 : i32
    %c0_i32_0 = arith.constant 0 : i32
    %c0_i32_1 = arith.constant 0 : i32
    return %arg0, %c0_i32, %c0_i32_0 : i32, i32, i32
  }
  func.func @transform_7(%arg0: i32) -> (i32, i32, i32) {
    %c0_i32 = arith.constant 0 : i32
    %c0_i32_0 = arith.constant 0 : i32
    %c0_i32_1 = arith.constant 0 : i32
    return %arg0, %c0_i32, %c0_i32_0 : i32, i32, i32
  }
}

</mosaic_0001>

<bundles_post_ra>
// kernel: tpu_custom_call.1
= control target key start
LH: loop header
LB: loop body
LE: loop exit
PB: predicated region body
PF: predicated region fallthrough
CT: control target
= control target key end

     0   :  { %s2560_s0 = inlined_call_operand.vmem [shape: f32[2,16,256], index: 0, kind: input, shape index: {}]   ;;  %s2561_s1 = inlined_call_operand.vmem [shape: f32[9,8,16], index: 1, kind: input, shape index: {}]   ;;  %s2562_s2 = inlined_call_operand.hbm [shape: f32[8,9], index: 2, kind: input, shape index: {}]   ;;  %s2563_s3 = inlined_call_operand.hbm [shape: f32[4,256], index: 3, kind: input, shape index: {}]   ;;  %s2564_s4 = inlined_call_operand.vmem [shape: f32[2,32,4], index: 4, kind: input, shape index: {}]   ;;  %s2565_s5 = inlined_call_operand.vmem [shape: f32[2,32,1], index: 5, kind: input, shape index: {}]   ;;  %s2566_s6 = inlined_call_operand.hbm [shape: f32[2,32,256], index: 6, kind: output, shape index: {0}]   ;;  %s2567_s7 = inlined_call_operand.hbm [shape: f32[2,32,256], index: 7, kind: output, shape index: {1}]  }
   0x1   :  { %2570 = sst [smem:[#allocation15_spill]] %s2560_s0 }
   0x2   :  { %13 = vsyncpa [#allocation4], 0 }
   0x3   :  { %14 = vsyncpa [#allocation7], 0 }
   0x4   :  { %15 = vsyncpa [#allocation5], 0 }
   0x5   :  { %17 = vsyncpa [#allocation5 + $0x1], 0 }
   0x6   :  { %18 = vsyncpa [#allocation10], 0 }
   0x7   :  { %20 = vsyncpa [#allocation10 + $0x1], 0  ;;  %s2122_s24 = smov 0   ;;  %s2124_s25 = smov 0  }
   0x8   :  { %s2126_s26 = smov 0   ;;  %s2128_s27 = smov 0  }
   0x9 LB: > { %s2143_s28 = sadd.s32 4294967295, %s2059_s27   ;;  %s1602_s29 = sadd.s32 4294967294, %s2059_s27   ;;  %s2059_s27 = sphi %s2128_s27, %s2579_s27   ;;  %s2055_s26 = sphi %s2126_s26, %s2578_s26   ;;  %s2051_s25 = sphi %s2124_s25, %s2577_s25   ;;  %s2047_s24 = sphi %s2122_s24, %s2576_s24  }
   0xa   : > { %s2147_s30 = sadd.s32 1, %s2059_s27   ;;  %s164_s8 = sadd.s32 1, %s2055_s26 }
   0xb   : > { %s161_s9 = ssub.s32 %s2059_s27, %s2147_s30  ;;  %p174_p0 = scmp.ne.s32.totalorder %s2055_s26, %s2051_s25 }
   0xc   : > { %p162_p1 = scmp.eq.s32.totalorder %s161_s9, 0  ;;  %p175_p2 = scmp.eq.s32.totalorder %s2143_s28, 1 }
   0xd   : > { %p180_p3 = scmp.ne.s32.totalorder %s2051_s25, %s2047_s24  ;;  %p181_p4 = scmp.eq.s32.totalorder %s1602_s29, 1 }
   0xe   : > { %s2158_s10 = scalar_select %p162_p1, %s2055_s26, %s164_s8  }
   0xf   : > { %p2160_p5 = por %p175_p2, %p174_p0  ;;  %p2164_p6 = por %p181_p4, %p180_p3 }
  0x10   : > { %p1603_p7 = scmp.ge.s32.totalorder %s2059_s27, 1  ;;  %p214_p8 = scmp.lt.s32.totalorder %s2059_s27, 3 }
  0x11   : > { %p1708_p9 = scmp.eq.s32.totalorder %s2143_s28, 0  ;;  %s229_s16 = sshll.u32 %s2562_s2, 4  ;;  %s230_s16 = int_to_ptr.hbm [resolvable:$true] %s229_s16 }
  0x12   : > { %p2171_p10 = pnand %p1603_p7, %p214_p8  ;;  %s2061_s17 = smov [#allocation3]  }
  0x13   : > { %s231_s18 = sshll.u32 %s2061_s17, 4  ;;  %s241_s21 = sshll.u32 %s2563_s3, 4  ;;  %s232_s18 = int_to_ptr.vmem [resolvable:$true] %s231_s18  ;;  %s242_s21 = int_to_ptr.hbm [resolvable:$true] %s241_s21 }
  0x14   : > { %p1694_p11 = pneg %p2171_p10  ;;  %s2062_s22 = smov [#allocation6]  }
  0x15   : > { %s243_s23 = sshll.u32 %s2062_s22, 4  ;;  %270 = sbr.rel (%p2171_p10) target bundleno = 643 (0x283), region = 44  ;;  %s244_s23 = int_to_ptr.vmem [resolvable:$true] %s243_s23 }
  0x16   : > { %p1695_p12 = pnand %p1708_p9, %p1694_p11 }
  0x18   : > { %1697 = dma.hbm_to_vmem [thread:$0]  (!%p1695_p12), %s230_s16, 128, %s232_s18, [#allocation4]  }
  0x19   : > { %1700 = dma.hbm_to_vmem [thread:$0]  (!%p1695_p12), %s242_s21, 128, %s244_s23, [#allocation7]  }
  0x1a   : > { %2030 = dma.done.wait (%p1708_p9), [#allocation4], 128  }
  0x1b   : > { %2032 = vsyncadd (%p1708_p9), [#allocation4], 4294967168 }
  0x1c   : > { %2034 = dma.done.wait (%p1708_p9), [#allocation7], 128  }
  0x1d   : > { %2036 = vsyncadd (%p1708_p9), [#allocation7], 4294967168  ;;  %v2195_v0 = vld [vmem:[#allocation6] sm:$0xff]  ;;  %s2063_s29 = smov 113   ;;  %s2064_s8 = smov 127   ;;  %v2069_v13 = vmov 0.0  }
  0x1e   : > { %v471_v1 = vsub.f32 1.0, %v2195_v0  ;;  %s2065_s9 = smov 111   ;;  %s2066_s13 = smov 1   ;;  %vm744_vm0 = vcmask 1039360   ;;  %vm485_vm1 = vcmask 908288   ;;  %vm655_vm2 = vcmask 924672  }
  0x1f   : > { %s2067_s14 = smov 15   ;;  %s2068_s15 = smov 17   ;;  %vm775_vm3 = vcmask 7168   ;;  %vm515_vm4 = vcmask 138240   ;;  %vm686_vm5 = vcmask 121856   ;;  %vm524_vm6 = vcmask 130048  }
  0x20   : > { %v643_v2 = vperm.slane %v471_v1, 3  ;;  %v473_v3 = vperm.slane %v471_v1, 2  ;;  %v644_v6 = vperm.slane %v471_v1, 7  ;;  %v474_v7 = vperm.slane %v471_v1, 6  ;;  %p313_p13 = scmp.lt.s32.totalorder %s2143_s28, 1  ;;  %s2574_s0 = sld [smem:[#allocation15_spill]] }
  0x21   : > { %s2568_s21 = smov 16   ;;  %s2071_s22 = smov 112   ;;  %vm1076_vm7 = vcmask 916480   ;;  %vm1260_vm8 = vcmask 1043456   ;;  %vm1247_vm9 = vcmask 31744  }
  0x22   : > { %v647_v4 = vperm.slane %v643_v2, 3  ;;  %v477_v5 = vperm.slane %v473_v3, 2  ;;  %v648_v8 = vperm.slane %v644_v6, 3  ;;  %v478_v9 = vperm.slane %v474_v7, 2  ;;  %s314_s16 = scalar_select %p313_p13, %s2143_s28, 1 }
  0x24   : > { %651 = vrot.lane.b32.xlu1 %v647_v4, %s2063_s29  ;;  %740 = vrot.lane.b32.xlu2 %v477_v5, %s2064_s8  ;;  %s1679_s17 = sshll.u32 %s314_s16, 5 }
  0x25   : > { %481 = vrot.lane.b32.xlu0 %v477_v5, %s2065_s9 }
  0x26   : > { %s317_s20 = scalar_lea.vmem %s2574_s0, %s1679_s17  ;;  %s1977_s17 = scalar_lea.hbm %s2567_s7, 128 }
  0x27   : > { %v2215_v10 = vld [vmem:[%s317_s20 + $0x18] sm:$0xff]  ;;  %v2217_v11 = vld [vmem:[%s317_s20 + $0x10] sm:$0xff]  ;;  %v2224_v15 = vld [vmem:[%s317_s20] sm:$0xff] }
  0x28   : > { %v1771_v12 = vpack.i.bf16 0.0, %v2215_v10  ;;  %v1766_v14 = vpack.i.bf16 %v2217_v11, %v2069_v13  ;;  %v2226_v16 = vld [vmem:[%s317_s20 + $0x8] sm:$0xff]  ;;  %v1831_v26 = vpack.i.bf16 %v2215_v10, %v2217_v11  ;;  %v1836_v57 = vpack.i.bf16 %v2224_v15, %v2069_v13  ;;  %s2477_s20 = sand.u32 1, %s2051_s25  }
  0x29   : > { %v1776_v17 = vpack.i.bf16 %v2226_v16, %v2224_v15  ;;  %v1856_v58 = vpack.i.bf16 0.0, %v2226_v16 }
  0x2c   : > { %653 = vrot.lane.b32.xlu1 %v648_v8, %s2063_s29  ;;  %742 = vrot.lane.b32.xlu2 %v478_v9, %s2064_s8 }
  0x2d   : > { %483 = vrot.lane.b32.xlu0 %v478_v9, %s2065_s9 }
  0x34   : > { %884 = vrot.lane.b32.xlu1 %v648_v8, %s2066_s13  ;;  %969 = vrot.lane.b32.xlu2 %v477_v5, %s2067_s14 }
  0x35   : > { %882 = vrot.lane.b32.xlu0 %v647_v4, %s2066_s13 }
  0x3c   : > { %1130 = vrot.lane.b32.xlu1 %v647_v4, %s2068_s15  ;;  %1132 = vrot.lane.b32.xlu2 %v648_v8, %s2068_s15 }
  0x3d   : > { %971 = vrot.lane.b32.xlu0 %v478_v9, %s2067_s14 }
  0x44   : > { %1767 = vrot.lane.b32.xlu2 %v1766_v14, %s2568_s21 }
  0x45   : > { %1772 = vrot.lane.b32.xlu0 %v1771_v12, %s2568_s21 }
  0x4c   : > { %1777 = vrot.lane.b32.xlu2 %v1776_v17, %s2568_s21 }
  0x7e   : > { %v741_v18 = vpop.permute.xlu2 %740 }
  0x7f   : > { %v749_v19 = vmul.f32 0.0, %v741_v18 }
  0x86   : > { %v743_v20 = vpop.permute.xlu2 %742 }
  0x87   : > { %v745_v21 = vsel %vm744_vm0, %v741_v18, %v743_v20  ;;  %v754_v22 = vmul.f32 %v743_v20, %v2215_v10  ;;  %v751_v28 = vmul.f32 %v743_v20, %v2226_v16 }
  0x88   : > { %v753_v23 = vmul.f32 %v745_v21, %v2217_v11  ;;  %v750_v27 = vmul.f32 %v745_v21, %v2224_v15 }
  0x89   : > { %v1791_v24 = vpack.i.bf16 %v749_v19, %v754_v22 }
  0x8a   : > { %v1816_v25 = vpack.i.bf16 %v753_v23, %v749_v19  ;;  %v1841_v31 = vpack.i.bf16 %v751_v28, %v750_v27 }
  0x8b   : > { %1792 = vrot.lane.b32.xlu0 %v1791_v24, %s2066_s13 }
  0x8c   : > { %1817 = vrot.lane.b32.xlu2 %v1816_v25, %s2066_s13 }
  0x8e   : > { %v970_v48 = vpop.permute.xlu2 %969 }
  0x8f   : > { %v980_v8 = vmul.f32 %v970_v48, %v2217_v11  ;;  %v977_v18 = vmul.f32 %v970_v48, %v2224_v15 }
  0x94   : > { %1832 = vrot.lane.b32.xlu2 %v1831_v26, %s2071_s22 }
  0x96   : > { %v652_v29 = vpop.permute.xlu1 %651  ;;  %v1133_v55 = vpop.permute.xlu2 %1132 }
  0x97   : > { %v482_v30 = vpop.permute.xlu0 %481  ;;  %v660_v42 = vmul.f32 0.0, %v652_v29  ;;  %v1140_v62 = vmul.f32 0.0, %v1133_v55 }
  0x98   : > { %v490_v35 = vmul.f32 0.0, %v482_v30 }
  0x9c   : > { %1842 = vrot.lane.b32.xlu2 %v1841_v31, %s2066_s13 }
  0x9e   : > { %v654_v32 = vpop.permute.xlu1 %653  ;;  %v1768_v25 = vpop.permute.xlu2 %1767 }
  0x9f   : > { %v484_v33 = vpop.permute.xlu0 %483  ;;  %v656_v40 = vsel %vm655_vm2, %v652_v29, %v654_v32  ;;  %v665_v44 = vmul.f32 %v654_v32, %v2215_v10  ;;  %v662_v13 = vmul.f32 %v654_v32, %v2226_v16  ;;  %v1770_v29 = vunpack.i.h.bf16 %v1768_v25 }
  0xa0   : > { %v486_v34 = vsel %vm485_vm1, %v482_v30, %v484_v33  ;;  %v495_v37 = vmul.f32 %v484_v33, %v2215_v10  ;;  %v664_v43 = vmul.f32 %v656_v40, %v2217_v11  ;;  %v492_v60 = vmul.f32 %v484_v33, %v2226_v16 }
  0xa1   : > { %v494_v36 = vmul.f32 %v486_v34, %v2217_v11  ;;  %v1786_v50 = vpack.i.bf16 %v660_v42, %v665_v44  ;;  %v491_v63 = vmul.f32 %v486_v34, %v2224_v15  ;;  %v661_v12 = vmul.f32 %v656_v40, %v2224_v15 }
  0xa2   : > { %v1781_v38 = vpack.i.bf16 %v490_v35, %v495_v37  ;;  %v1811_v51 = vpack.i.bf16 %v664_v43, %v660_v42  ;;  %v1769_v30 = vunpack.i.l.bf16 %v1768_v25 }
  0xa3   : > { %v1801_v39 = vpack.i.bf16 %v494_v36, %v490_v35  ;;  %v1806_v6 = vpack.i.bf16 %v492_v60, %v491_v63  ;;  %v1821_v17 = vpack.i.bf16 %v662_v13, %v661_v12  ;;  %v2075_v60 = vmov 7   ;;  %v1225_v12 = vld [vmem:[%s2565_s5 + $0x10] sm:$0xff] }
  0xa4   : > { %1782 = vrot.lane.b32.xlu1 %v1781_v38, %s2068_s15  ;;  %v592_v37 = vsel %vm524_vm6, %v1769_v30, %v1770_v29  ;;  %v2076_v63 = vmov 6   ;;  %v2078_v13 = vmov 3  }
  0xa5   : > { %1802 = vrot.lane.b32.xlu0 %v1801_v39, %s2068_s15  ;;  %615 = vmatpush.msra.mxu2 %v592_v37 }
  0xa6   : > { %v885_v41 = vpop.permute.xlu1 %884  ;;  %v1778_v31 = vpop.permute.xlu2 %1777  ;;  %1888 = vset.pattern.permute.xlu2 %v2078_v13 }
  0xa7   : > { %v892_v45 = vmul.f32 0.0, %v885_v41  ;;  %v883_v46 = vpop.permute.xlu0 %882  ;;  %v1780_v33 = vunpack.i.h.bf16 %v1778_v31  ;;  %v1779_v34 = vunpack.i.l.bf16 %v1778_v31 }
  0xa8   : > { %v886_v47 = vsel %vm775_vm3, %v883_v46, %v885_v41  ;;  %v890_v53 = vmul.f32 %v883_v46, %v2224_v15  ;;  %v893_v1 = vmul.f32 %v883_v46, %v2217_v11 }
  0xa9   : > { %v891_v49 = vmul.f32 %v886_v47, %v2226_v16  ;;  %v894_v2 = vmul.f32 %v886_v47, %v2215_v10  ;;  %v591_v40 = vsel %vm524_vm6, %v1779_v34, %v1780_v33  ;;  %v2072_v47 = vmov 2  }
  0xaa   : > { %v1796_v56 = vpack.i.bf16 %v890_v53, %v892_v45  ;;  %1887 = vset.pattern.permute.xlu1 %v2072_v47 }
  0xab   : > { %v1851_v52 = vpack.i.bf16 %v892_v45, %v891_v49  ;;  %v1846_v7 = vpack.i.bf16 %v894_v2, %v893_v1 }
  0xac   : > { %1787 = vrot.lane.b32.xlu1 %v1786_v50, %s2067_s14 }
  0xad   : > { %1812 = vrot.lane.b32.xlu0 %v1811_v51, %s2067_s14  ;;  %1852 = vrot.lane.b32.xlu2 %v1851_v52, %s2064_s8 }
  0xae   : > { %v1131_v54 = vpop.permute.xlu1 %1130 }
  0xaf   : > { %v1134_v59 = vsel %vm515_vm4, %v1131_v54, %v1133_v55  ;;  %v972_v3 = vpop.permute.xlu0 %971  ;;  %v1141_v20 = vmul.f32 %v1131_v54, %v2217_v11  ;;  %v1138_v27 = vmul.f32 %v1131_v54, %v2224_v15 }
  0xb0   : > { %v1139_v61 = vmul.f32 %v1134_v59, %v2226_v16  ;;  %v973_v4 = vsel %vm686_vm5, %v970_v48, %v972_v3  ;;  %v979_v19 = vmul.f32 0.0, %v972_v3  ;;  %v1142_v21 = vmul.f32 %v1134_v59, %v2215_v10  ;;  %v2294_v48 = vld [vmem:[#allocation3] sm:$0xff] }
  0xb1   : > { %v981_v9 = vmul.f32 %v973_v4, %v2215_v10  ;;  %v978_v24 = vmul.f32 %v973_v4, %v2226_v16  ;;  %v1876_v28 = vpack.i.bf16 %v1138_v27, %v1140_v62  ;;  %v2074_v59 = vmov 1   ;;  %v1660_v27 = vld [vmem:[%s2565_s5 + $0x38] sm:$0xff] }
  0xb2   : > { %v1881_v5 = vpack.i.bf16 %v1140_v62, %v1139_v61  ;;  %v1826_v22 = vpack.i.bf16 %v977_v18, %v979_v19  ;;  %v1871_v23 = vpack.i.bf16 %v1142_v21, %v1141_v20  ;;  %1886 = vset.pattern.permute.xlu0 %v2074_v59  ;;  %v2077_v4 = vmov 0   ;;  %v1657_v18 = vld [vmem:[%s2565_s5 + $0x20] sm:$0xff] }
  0xb3   : > { %v1861_v14 = vpack.i.bf16 %v981_v9, %v980_v8  ;;  %v1866_v26 = vpack.i.bf16 %v979_v19, %v978_v24  ;;  %v2079_v19 = vmov 5  }
  0xb4   : > { %1797 = vrot.lane.b32.xlu1 %v1796_v56, %s2064_s8 }
  0xb5   : > { %1837 = vrot.lane.b32.xlu0 %v1836_v57, %s2071_s22  ;;  %1857 = vrot.lane.b32.xlu2 %v1856_v58, %s2071_s22  ;;  %v2073_v57 = vmov 4   ;;  %v1619_v58 = vld [vmem:[%s2561_s1 + $0x8] sm:$0xff]  ;;  %s1610_s22 = sshll.u32 %s2477_s20, 6 }
  0xb6   : > { %s2482_s23 = scalar_lea.vmem [#allocation9], %s1610_s22 }
  0xb7   : > { %v1773_v32 = vpop.permute.xlu0 %1772 }
  0xb8   : > { %v1775_v35 = vunpack.i.h.bf16 %v1773_v32  ;;  %v1774_v36 = vunpack.i.l.bf16 %v1773_v32 }
  0xba   : > { %v593_v38 = vsel %vm524_vm6, %v1770_v29, %v1774_v36  ;;  %v590_v39 = vsel %vm524_vm6, %v1775_v35, %v1779_v34  ;;  %v496_v35 = vld [vmem:[%s2561_s1] sm:$0xff] }
  0xbb   : > { %635 = vmatpush.msra.mxu3 %v593_v38  ;;  %616 = vmatpush.msra.mxu2 %v590_v39 }
  0xbc   : > { %1807 = vrot.lane.b32.xlu1 %v1806_v6, %s2068_s15  ;;  %1620 = vmatmul.msk.f32.vlgmr.msra.gmra.mxu2 %vm524_vm6, %v1619_v58  ;;  %s1482_s15 = sshll.u32 %s2482_s23, 4  ;;  %s2508_s15 = int_to_ptr.vmem [resolvable:$true] %s1482_s15 }
  0xbd   : > { %1847 = vrot.lane.b32.xlu0 %v1846_v7, %s2064_s8  ;;  %1882 = vrot.lane.b32.xlu2 %v1881_v5, %s2065_s9  ;;  %v1625_v5 = vld [vmem:[%s2561_s1 + $0x18] sm:$0xff]  ;;  %s1680_s8 = sshll.u32 %s2143_s28, 6 }
  0xbe   : > { %636 = vmatpush.msra.mxu3 %v591_v40  ;;  %s2506_s18 = scalar_lea.hbm %s2566_s6, %s1680_s8 }
  0xbf   : > { %1621 = vmatmul.msk.f32.vlgmr.msra.gmra.mxu3 %vm524_vm6, %v1619_v58 }
  0xc4   : > { %1822 = vrot.lane.b32.xlu1 %v1821_v17, %s2067_s14  ;;  %s1481_s14 = scalar_lea.hbm %s2567_s7, %s1680_s8 }
  0xc5   : > { %1862 = vrot.lane.b32.xlu0 %v1861_v14, %s2063_s29  ;;  %361 = vperm.xlu2 %1888, %v2294_v48   ;;  %s1484_s28 = sshll.u32 %s1481_s14, 4  ;;  %s1485_s28 = int_to_ptr.hbm [resolvable:$true] %s1484_s28 }
  0xc6   : > { %s1971_s13 = sshra.s32 %s1485_s28, 4  ;;  %s1972_s13 = int_to_ptr.hbm [resolvable:$true] %s1971_s13 }
  0xc7   : > { %s1973_s8 = scalar_lea.hbm %s1972_s13, 64  ;;  %p1978_p3 = scmp.lt.s32.totalorder %s1972_s13, %s2567_s7 }
  0xc8   : > { %p1974_p0 = scmp.ne.s32.totalorder %s1972_s13, %s1973_s8  ;;  %p1979_p4 = scmp.lt.s32.totalorder %s1977_s17, %s1973_s8 }
  0xca   : > { %p1975_p1 = pnand %p1974_p0, %p2160_p5  ;;  %p1980_p7 = por %p1979_p4, %p1978_p3 }
  0xcc   : > { %1827 = vrot.lane.b32.xlu1 %v1826_v22, %s2063_s29  ;;  %p1976_p2 = pneg %p1975_p1 }
  0xcd   : > { %1872 = vrot.lane.b32.xlu0 %v1871_v23, %s2065_s9  ;;  %1890 = vset.pattern.permute.xlu2 %v2079_v19  ;;  %v1634_v19 = vld [vmem:[%s2561_s1 + $0x30] sm:$0xff] }
  0xce   : > { %393 = vperm.xlu2 %1890, %v2294_v48   ;;  %p1981_p8 = pnand %p1980_p7, %p1976_p2 }
  0xd4   : > { %1867 = vrot.lane.b32.xlu1 %v1866_v26, %s2063_s29  ;;  %s2486_s29 = scalar_lea.vmem [#allocation8], %s1610_s22  ;;  %s1467_s22 = sshll.u32 %s2506_s18, 4  ;;  %s1468_s22 = int_to_ptr.hbm [resolvable:$true] %s1467_s22 }
  0xd5   : > { %334 = vperm.xlu0 %1886, %v2294_v48   ;;  %s1465_s19 = sshll.u32 %s2486_s29, 4  ;;  %s1466_s19 = int_to_ptr.vmem [resolvable:$true] %s1465_s19 }
  0xdc   : > { %1877 = vrot.lane.b32.xlu1 %v1876_v28, %s2065_s9  ;;  %s1453_s9 = scalar_lea.sflag [#allocation10], %s2477_s20 }
  0xdd   : > { %1891 = vset.pattern.permute.xlu0 %v2076_v63  ;;  %v1622_v63 = vld [vmem:[%s2561_s1 + $0x10] sm:$0xff] }
  0xde   : > { %412 = vperm.xlu0 %1891, %v2294_v48  }
  0xe4   : > { %347 = vperm.xlu1 %1887, %v2294_v48  }
  0xe6   : > { %v1818_v41 = vpop.permute.xlu2 %1817  ;;  %1896 = vset.pattern.permute.xlu0 %v2077_v4 }
  0xe7   : > { %v1820_v42 = vunpack.i.h.bf16 %v1818_v41  ;;  %v1819_v43 = vunpack.i.l.bf16 %v1818_v41 }
  0xe9   : > { %v778_v44 = vsel %vm775_vm3, %v1819_v43, %v1820_v42 }
  0xea   : > { %801 = vmatpush.msrb.mxu2 %v778_v44 }
  0xec   : > { %1889 = vset.pattern.permute.xlu1 %v2073_v57  ;;  %v2080_v57 = vmov 8  }
  0xed   : > { %375 = vperm.xlu1 %1889, %v2294_v48   ;;  %1893 = vset.pattern.permute.xlu2 %v2080_v57 }
  0xee   : > { %v2292_v45 = vpop.permute.xlu2 %1832  ;;  %446 = vperm.xlu2 %1893, %v2294_v48  }
  0xef   : > { %v1835_v32 = vunpack.i.h.bf16 %v2292_v45  ;;  %v1834_v33 = vunpack.i.l.bf16 %v2292_v45 }
  0xf5   : > { %1892 = vset.pattern.permute.xlu1 %v2075_v60 }
  0xf6   : > { %v1843_v46 = vpop.permute.xlu2 %1842  ;;  %431 = vperm.xlu1 %1892, %v2294_v48   ;;  %1895 = vset.pattern.permute.xlu2 %v2077_v4 }
  0xf7   : > { %v1845_v49 = vunpack.i.h.bf16 %v1843_v46  ;;  %v1844_v50 = vunpack.i.l.bf16 %v1843_v46 }
  0xf9   : > { %v777_v56 = vsel %vm775_vm3, %v1844_v50, %v1845_v49 }
  0xfd   : > { %v1793_v51 = vpop.permute.xlu0 %1792 }
  0xfe   : > { %v1795_v52 = vunpack.i.h.bf16 %v1793_v51  ;;  %v1794_v53 = vunpack.i.l.bf16 %v1793_v51  ;;  %1894 = vset.pattern.permute.xlu1 %v2077_v4 }
  0xff   : > { %460 = vperm.xlu1 %1894, %v2294_v48  }
 0x100   : > { %v779_v54 = vsel %vm775_vm3, %v1820_v42, %v1794_v53  ;;  %v776_v55 = vsel %vm775_vm3, %v1795_v52, %v1844_v50  ;;  %v1079_v53 = vsel %vm1076_vm7, %v1834_v33, %v1835_v32  ;;  %v338_v33 = vperm.slane %v2195_v0, 0 }
 0x101   : > { %821 = vmatpush.msrb.mxu3 %v779_v54  ;;  %802 = vmatpush.msrb.mxu2 %v776_v55 }
 0x102   : > { %1626 = vmatmul.msk.f32.vlgmr.msrb.gmra.mxu2 %vm524_vm6, %v1625_v5 }
 0x103   : > { %822 = vmatpush.msrb.mxu3 %v777_v56  ;;  %v1631_v56 = vld [vmem:[%s2561_s1 + $0x28] sm:$0xff] }
 0x104   : > { %1627 = vmatmul.msk.f32.vlgmr.msrb.gmra.mxu3 %vm524_vm6, %v1625_v5 }
 0x107   : > { %1239 = vperm.xlu1 %1894, %v1225_v12   ;;  %v1853_v20 = vpop.permute.xlu2 %1852 }
 0x108   : > { %v1855_v36 = vunpack.i.h.bf16 %v1853_v20  ;;  %v1854_v37 = vunpack.i.l.bf16 %v1853_v20 }
 0x10a   : > { %v917_v52 = vsel %vm744_vm0, %v1854_v37, %v1855_v36  ;;  %v364_v36 = vperm.slane %v2195_v0, 2 }
 0x10f   : > { %1345 = vperm.xlu1 %1894, %v1657_v18   ;;  %v1858_v44 = vpop.permute.xlu2 %1857 }
 0x110   : > { %v1859_v49 = vunpack.i.l.bf16 %v1858_v44  ;;  %v1860_v50 = vunpack.i.h.bf16 %v1858_v44 }
 0x116   : > { %v1783_v61 = vpop.permute.xlu1 %1782 }
 0x117   : > { %v1803_v62 = vpop.permute.xlu0 %1802  ;;  %v1784_v1 = vunpack.i.l.bf16 %v1783_v61  ;;  %v1785_v21 = vunpack.i.h.bf16 %v1783_v61  ;;  %1360 = vperm.xlu1 %1894, %v1660_v27  }
 0x118   : > { %v1805_v2 = vunpack.i.h.bf16 %v1803_v62  ;;  %v1804_v3 = vunpack.i.l.bf16 %v1803_v62 }
 0x11a   : > { %v518_v6 = vsel %vm515_vm4, %v1804_v3, %v1805_v2  ;;  %v519_v7 = vsel %vm515_vm4, %v1805_v2, %v1784_v1 }
 0x11b   : > { %542 = vmatpush.msra.mxu0 %v518_v6  ;;  %562 = vmatpush.msra.mxu1 %v519_v7  ;;  %v1078_v6 = vsel %vm1076_vm7, %v1859_v49, %v1860_v50 }
 0x11e   : > { %v2318_v8 = vpop.permute.xlu1 %1787 }
 0x11f   : > { %v1813_v9 = vpop.permute.xlu0 %1812  ;;  %v1789_v22 = vunpack.i.l.bf16 %v2318_v8  ;;  %v1790_v58 = vunpack.i.h.bf16 %v2318_v8 }
 0x120   : > { %v1815_v23 = vunpack.i.h.bf16 %v1813_v9  ;;  %v1814_v24 = vunpack.i.l.bf16 %v1813_v9  ;;  %v1637_v9 = vld [vmem:[%s2561_s1 + $0x38] sm:$0xff] }
 0x122   : > { %v689_v45 = vsel %vm686_vm5, %v1814_v24, %v1815_v23  ;;  %v690_v46 = vsel %vm686_vm5, %v1815_v23, %v1789_v22  ;;  %v1883_v23 = vpop.permute.xlu2 %1882 }
 0x123   : > { %v1885_v24 = vunpack.i.h.bf16 %v1883_v23 }
 0x126   : > { %v1798_v14 = vpop.permute.xlu1 %1797 }
 0x127   : > { %v2325_v17 = vpop.permute.xlu0 %1837  ;;  %v1799_v34 = vunpack.i.l.bf16 %v1798_v14  ;;  %v1800_v40 = vunpack.i.h.bf16 %v1798_v14 }
 0x128   : > { %v1839_v43 = vunpack.i.l.bf16 %v2325_v17  ;;  %v1840_v47 = vunpack.i.h.bf16 %v2325_v17 }
 0x129   : > { %v916_v51 = vsel %vm744_vm0, %v1800_v40, %v1854_v37 }
 0x12a   : > { %v1080_v59 = vsel %vm1076_vm7, %v1835_v32, %v1839_v43  ;;  %v1077_v62 = vsel %vm1076_vm7, %v1840_v47, %v1859_v49  ;;  %v350_v32 = vperm.slane %v2195_v0, 1  ;;  %v365_v43 = vperm.slane %v2195_v0, 6 }
 0x12c   : > { %v354_v37 = vperm.slane %v350_v32, 1 }
 0x12e   : > { %v1808_v25 = vpop.permute.xlu1 %1807 }
 0x12f   : > { %v1848_v26 = vpop.permute.xlu0 %1847  ;;  %v1810_v28 = vunpack.i.h.bf16 %v1808_v25  ;;  %v1809_v29 = vunpack.i.l.bf16 %v1808_v25  ;;  %v1884_v25 = vunpack.i.l.bf16 %v1883_v23 }
 0x130   : > { %v1850_v30 = vunpack.i.h.bf16 %v1848_v26  ;;  %v1849_v31 = vunpack.i.l.bf16 %v1848_v26 }
 0x131   : > { %v516_v38 = vsel %vm515_vm4, %v1785_v21, %v1809_v29  ;;  %v517_v39 = vsel %vm515_vm4, %v1809_v29, %v1810_v28  ;;  %v1640_v28 = vld [vmem:[%s2561_s1 + $0x40] sm:$0xff] }
 0x132   : > { %543 = vmatpush.msra.mxu0 %v516_v38  ;;  %563 = vmatpush.msra.mxu1 %v517_v39  ;;  %v918_v41 = vsel %vm744_vm0, %v1849_v31, %v1850_v30  ;;  %v919_v42 = vsel %vm744_vm0, %v1850_v30, %v1799_v34  ;;  %v1165_v31 = vsel %vm485_vm1, %v1884_v25, %v1885_v24  ;;  %v351_v34 = vperm.slane %v2195_v0, 5 }
 0x133   : > { %1617 = vmatmul.msk.f32.vlgmr.msra.gmra.mxu0 %vm524_vm6, %v496_v35  ;;  %1618 = vmatmul.msk.f32.vlgmr.msra.gmra.mxu1 %vm524_vm6, %v496_v35  ;;  %v339_v35 = vperm.slane %v2195_v0, 4  ;;  %v342_v38 = vperm.slane %v338_v33, 0  ;;  %v1614_v39 = vrot.slane %v2195_v0, 10 }
 0x134   : > { %712 = vmatpush.msrb.mxu0 %v689_v45  ;;  %732 = vmatpush.msrb.mxu1 %v690_v46  ;;  %v378_v45 = vperm.slane %v2195_v0, 3  ;;  %v368_v46 = vperm.slane %v364_v36, 2 }
 0x135   : > { %941 = vmatpush.msra.mxu2 %v918_v41  ;;  %961 = vmatpush.msra.mxu3 %v919_v42  ;;  %v355_v42 = vperm.slane %v351_v34, 1  ;;  %v343_v44 = vperm.slane %v339_v35, 0  ;;  %v391_v50 = vmul.f32 %v1614_v39, %v2195_v0 }
 0x136   : > { %v1823_v54 = vpop.permute.xlu1 %1822  ;;  %v382_v57 = vperm.slane %v378_v45, 3 }
 0x137   : > { %v1863_v55 = vpop.permute.xlu0 %1862  ;;  %942 = vmatpush.msra.mxu2 %v916_v51  ;;  %962 = vmatpush.msra.mxu3 %v917_v52  ;;  %v1825_v60 = vunpack.i.h.bf16 %v1823_v54  ;;  %v1824_v61 = vunpack.i.l.bf16 %v1823_v54  ;;  %v1615_v51 = vrot.slane %v2195_v0, 11  ;;  %v362_v52 = vpop.permute.xlu2 %361  ;;  %v379_v54 = vperm.slane %v2195_v0, 7 }
 0x138   : > { %v1865_v1 = vunpack.i.h.bf16 %v1863_v55  ;;  %v1864_v2 = vunpack.i.l.bf16 %v1863_v55  ;;  %1632 = vmatmul.msk.f32.vlgmr.msra.gmra.mxu2 %vm524_vm6, %v1631_v56  ;;  %1633 = vmatmul.msk.f32.vlgmr.msra.gmra.mxu3 %vm524_vm6, %v1631_v56  ;;  %v369_v55 = vperm.slane %v365_v43, 2 }
 0x139   : > { %1102 = vmatpush.msrb.mxu2 %v1079_v53  ;;  %1122 = vmatpush.msrb.mxu3 %v1080_v59  ;;  %v687_v3 = vsel %vm686_vm5, %v1790_v58, %v1824_v61  ;;  %v688_v5 = vsel %vm686_vm5, %v1824_v61, %v1825_v60  ;;  %v1616_v58 = vrot.slane %v2195_v0, 9  ;;  %v370_v59 = vmul.f32 %v368_v46, %v362_v52 }
 0x13a   : > { %713 = vmatpush.msrb.mxu0 %v687_v3  ;;  %733 = vmatpush.msrb.mxu1 %v688_v5  ;;  %v1005_v7 = vsel %vm655_vm2, %v1864_v2, %v1865_v1  ;;  %v397_v61 = vperm.slane %v391_v50, 0  ;;  %v398_v3 = vperm.slane %v391_v50, 4 }
 0x13b   : > { %1103 = vmatpush.msrb.mxu2 %v1077_v62  ;;  %1623 = vmatmul.msk.f32.vlgmr.msrb.gmra.mxu0 %vm524_vm6, %v1622_v63  ;;  %v410_v62 = vmul.f32 %v1615_v51, %v2195_v0 }
 0x13c   : > { %1624 = vmatmul.msk.f32.vlgmr.msrb.gmra.mxu1 %vm524_vm6, %v1622_v63  ;;  %848 = vmatpush.msra.mxu0 %v2217_v11  ;;  %v1628_v11 = vld [vmem:[%s2561_s1 + $0x20] sm:$0xff]  ;;  %v383_v63 = vperm.slane %v379_v54, 3 }
 0x13d   : > { %868 = vmatpush.msra.mxu1 %v2215_v10  ;;  %1123 = vmatpush.msrb.mxu3 %v1078_v6  ;;  %v429_v6 = vmul.f32 %v1616_v58, %v2195_v0 }
 0x13e   : > { %v1828_v8 = vpop.permute.xlu1 %1827  ;;  %849 = vmatpush.msra.mxu0 %v2224_v15 }
 0x13f   : > { %v1829_v12 = vunpack.i.l.bf16 %v1828_v8  ;;  %869 = vmatpush.msra.mxu1 %v2226_v16  ;;  %v1873_v15 = vpop.permute.xlu0 %1872  ;;  %v1830_v14 = vunpack.i.h.bf16 %v1828_v8 }
 0x140   : > { %1028 = vmatpush.msrb.mxu0 %v1005_v7  ;;  %1638 = vmatmul.msk.f32.vlgmr.msrb.gmra.mxu2 %vm524_vm6, %v1637_v9  ;;  %v1875_v48 = vunpack.i.h.bf16 %v1873_v15  ;;  %v1874_v13 = vunpack.i.l.bf16 %v1873_v15  ;;  %v402_v15 = vperm.slane %v398_v3, 0 }
 0x141   : > { %v1006_v10 = vsel %vm655_vm2, %v1865_v1, %v1829_v12  ;;  %1639 = vmatmul.msk.f32.vlgmr.msrb.gmra.mxu3 %vm524_vm6, %v1637_v9  ;;  %v371_v1 = vmul.f32 %v369_v55, %v362_v52  ;;  %v401_v9 = vperm.slane %v397_v61, 0  ;;  %v416_v12 = vperm.slane %v410_v62, 0 }
 0x142   : > { %1048 = vmatpush.msrb.mxu1 %v1006_v10  ;;  %v1166_v22 = vsel %vm485_vm1, %v1874_v13, %v1875_v48  ;;  %v394_v13 = vpop.permute.xlu2 %393  ;;  %v638_v43 = vpop.f32.mrf.mxu3 }
 0x143   : > { %1629 = vmatmul.msk.f32.vlgmr.msra.gmra.mxu0 %vm524_vm6, %v1628_v11 }
 0x144   : > { %1630 = vmatmul.msk.f32.vlgmr.msra.gmra.mxu1 %vm524_vm6, %v1628_v11 }
 0x146   : > { %v1868_v16 = vpop.permute.xlu1 %1867 }
 0x147   : > { %v1870_v17 = vunpack.i.h.bf16 %v1868_v16  ;;  %v1869_v18 = vunpack.i.l.bf16 %v1868_v16  ;;  %v335_v41 = vpop.permute.xlu0 %334  ;;  %v435_v16 = vperm.slane %v429_v6, 1 }
 0x148   : > { %v344_v49 = vmul.f32 %v342_v38, %v335_v41  ;;  %v345_v56 = vmul.f32 %v343_v44, %v335_v41 }
 0x149   : > { %v1003_v20 = vsel %vm655_vm2, %v1830_v14, %v1869_v18  ;;  %v1004_v21 = vsel %vm655_vm2, %v1869_v18, %v1870_v17  ;;  %v403_v17 = vmul.f32 %v401_v9, %v394_v13  ;;  %v420_v18 = vperm.slane %v416_v12, 0 }
 0x14a   : > { %1029 = vmatpush.msrb.mxu0 %v1003_v20  ;;  %1049 = vmatpush.msrb.mxu1 %v1004_v21  ;;  %v436_v20 = vperm.slane %v429_v6, 5  ;;  %v447_v34 = vpop.permute.xlu2 %446 }
 0x14b   : > { %1635 = vmatmul.msk.f32.vlgmr.msrb.gmra.mxu0 %vm524_vm6, %v1634_v19 }
 0x14c   : > { %1636 = vmatmul.msk.f32.vlgmr.msrb.gmra.mxu1 %vm524_vm6, %v1634_v19  ;;  %1189 = vmatpush.msra.mxu0 %v1166_v22  ;;  %v404_v22 = vmul.f32 %v402_v15, %v394_v13 }
 0x14e   : > { %v1878_v4 = vpop.permute.xlu1 %1877 }
 0x14f   : > { %v1880_v26 = vunpack.i.h.bf16 %v1878_v4  ;;  %v1879_v27 = vunpack.i.l.bf16 %v1878_v4  ;;  %v439_v4 = vperm.slane %v435_v16, 1 }
 0x150   : > { %v413_v19 = vpop.permute.xlu0 %412 }
 0x151   : > { %v1164_v29 = vsel %vm485_vm1, %v1880_v26, %v1884_v25  ;;  %v1167_v30 = vsel %vm485_vm1, %v1875_v48, %v1879_v27  ;;  %v417_v48 = vperm.slane %v410_v62, 4  ;;  %v422_v24 = vmul.f32 %v420_v18, %v413_v19 }
 0x152   : > { %1190 = vmatpush.msra.mxu0 %v1164_v29  ;;  %1209 = vmatpush.msra.mxu1 %v1167_v30  ;;  %v449_v25 = vperm.slane %v391_v50, 1  ;;  %v440_v26 = vperm.slane %v436_v20, 1  ;;  %v450_v29 = vperm.slane %v391_v50, 5  ;;  %v1224_v20 = vld [vmem:[%s2565_s5 + $0x8] sm:$0xff] }
 0x153   : > { %1641 = vmatmul.msk.f32.vlgmr.msra.gmra.mxu0 %vm524_vm6, %v1640_v28  ;;  %v421_v23 = vperm.slane %v417_v48, 0  ;;  %1234 = vperm.xlu0 %1896, %v1224_v20  }
 0x154   : > { %1210 = vmatpush.msra.mxu1 %v1165_v31  ;;  %v453_v33 = vperm.slane %v449_v25, 1  ;;  %v1653_v25 = vld [vmem:[%s2564_s4 + $0x20] sm:$0xff] }
 0x155   : > { %1642 = vmatmul.msk.f32.vlgmr.msra.gmra.mxu1 %vm524_vm6, %v1640_v28  ;;  %v423_v28 = vmul.f32 %v421_v23, %v413_v19 }
 0x156   : > { %v348_v40 = vpop.permute.xlu1 %347  ;;  %v455_v39 = vmul.f32 %v453_v33, %v447_v34  ;;  %v1655_v33 = vld [vmem:[%s2564_s4 + $0x30] sm:$0xff] }
 0x157   : > { %v356_v47 = vmul.f32 %v354_v37, %v348_v40  ;;  %v357_v53 = vmul.f32 %v355_v42, %v348_v40  ;;  %v454_v37 = vperm.slane %v450_v29, 1  ;;  %v618_v40 = vpop.f32.mrf.mxu2  ;;  %v1220_v29 = vld [vmem:[%s2564_s4 + $0x8] sm:$0xff] }
 0x159   : > { %v358_v60 = vadd.f32 %v356_v47, %v344_v49  ;;  %v359_v2 = vadd.f32 %v357_v53, %v345_v56  ;;  %v456_v42 = vmul.f32 %v454_v37, %v447_v34  ;;  %v1222_v34 = vld [vmem:[%s2564_s4 + $0x18] sm:$0xff] }
 0x15b   : > { %v372_v8 = vadd.f32 %v370_v59, %v358_v60  ;;  %v373_v10 = vadd.f32 %v371_v1, %v359_v2 }
 0x15f   : > { %v376_v5 = vpop.permute.xlu1 %375 }
 0x160   : > { %v384_v7 = vmul.f32 %v382_v57, %v376_v5  ;;  %v385_v11 = vmul.f32 %v383_v63, %v376_v5 }
 0x162   : > { %v386_v14 = vadd.f32 %v384_v7, %v372_v8  ;;  %v387_v21 = vadd.f32 %v385_v11, %v373_v10 }
 0x164   : > { %v405_v0 = vsub.f32 %v386_v14, %v403_v17  ;;  %v406_v27 = vsub.f32 %v387_v21, %v404_v22  ;;  %v1223_v21 = vld [vmem:[%s2565_s5] sm:$0xff] }
 0x165   : > { %1229 = vperm.xlu2 %1895, %v1223_v21  }
 0x166   : > { %v424_v32 = vsub.f32 %v405_v0, %v422_v24  ;;  %v425_v36 = vsub.f32 %v406_v27, %v423_v28  ;;  %v1659_v27 = vld [vmem:[%s2565_s5 + $0x30] sm:$0xff]  ;;  %v1226_v28 = vld [vmem:[%s2565_s5 + $0x18] sm:$0xff] }
 0x167   : > { %1355 = vperm.xlu0 %1896, %v1659_v27  }
 0x168   : > { %v432_v30 = vpop.permute.xlu1 %431 }
 0x169   : > { %v441_v31 = vmul.f32 %v439_v4, %v432_v30  ;;  %v442_v35 = vmul.f32 %v440_v26, %v432_v30  ;;  %v1219_v4 = vld [vmem:[%s2564_s4] sm:$0xff]  ;;  %v1654_v30 = vld [vmem:[%s2564_s4 + $0x28] sm:$0xff] }
 0x16b   : > { %v443_v38 = vsub.f32 %v424_v32, %v441_v31  ;;  %v444_v41 = vsub.f32 %v425_v36, %v442_v35  ;;  %v1658_v31 = vld [vmem:[%s2565_s5 + $0x28] sm:$0xff]  ;;  %v1221_v32 = vld [vmem:[%s2564_s4 + $0x10] sm:$0xff]  ;;  %v1656_v35 = vld [vmem:[%s2564_s4 + $0x38] sm:$0xff] }
 0x16d   : > { %v457_v46 = vsub.f32 %v443_v38, %v455_v39  ;;  %v458_v47 = vsub.f32 %v444_v41, %v456_v42  ;;  %1244 = vperm.xlu2 %1895, %v1226_v28  }
 0x171   : > { %v461_v49 = vpop.permute.xlu1 %460 }
 0x172   : > { %v463_v50 = vsub.f32 %v461_v49, %v457_v46  ;;  %v464_v51 = vsub.f32 %v461_v49, %v458_v47 }
 0x175   : > { %1350 = vperm.xlu2 %1895, %v1658_v31  }
 0x179   : > { %v1240_v37 = vpop.permute.xlu1 %1239 }
 0x181   : > { %v1346_v39 = vpop.permute.xlu1 %1345 }
 0x185   : > { %v804_v53 = vpop.f32.mrf.mxu2 }
 0x187   : > { %v824_v56 = vpop.f32.mrf.mxu3 }
 0x1b0   : > { %v545_v44 = vpop.f32.mrf.mxu0  ;;  %v565_v45 = vpop.f32.mrf.mxu1 }
 0x1b1   : > { %v568_v54 = vadd.f32 %v545_v44, %v463_v50  ;;  %v569_v57 = vadd.f32 %v565_v45, %v464_v51 }
 0x1b3   : > { %v641_v58 = vadd.f32 %v618_v40, %v568_v54  ;;  %v642_v59 = vadd.f32 %v638_v43, %v569_v57 }
 0x1b8   : > { %v715_v52 = vpop.f32.mrf.mxu0 }
 0x1b9   : > { %v735_v55 = vpop.f32.mrf.mxu1  ;;  %v738_v60 = vadd.f32 %v715_v52, %v641_v58 }
 0x1ba   : > { %v739_v62 = vadd.f32 %v735_v55, %v642_v59 }
 0x1bb   : > { %v944_v1 = vpop.f32.mrf.mxu2  ;;  %v827_v2 = vadd.f32 %v804_v53, %v738_v60  ;;  %v964_v3 = vpop.f32.mrf.mxu3 }
 0x1bc   : > { %v828_v5 = vadd.f32 %v824_v56, %v739_v62 }
 0x1bf   : > { %v1230_v36 = vpop.permute.xlu2 %1229 }
 0x1c0   : > { %v851_v61 = vpop.f32.mrf.mxu0 }
 0x1c1   : > { %v871_v63 = vpop.f32.mrf.mxu1  ;;  %v874_v6 = vadd.f32 %v851_v61, %v827_v2 }
 0x1c2   : > { %v875_v7 = vadd.f32 %v871_v63, %v828_v5 }
 0x1c3   : > { %v967_v9 = vadd.f32 %v944_v1, %v874_v6  ;;  %v1105_v15 = vpop.f32.mrf.mxu2  ;;  %v1361_v6 = vpop.permute.xlu1 %1360 }
 0x1c4   : > { %v968_v11 = vadd.f32 %v964_v3, %v875_v7  ;;  %v1125_v13 = vpop.f32.mrf.mxu3 }
 0x1c5   : > { %v1235_v45 = vpop.permute.xlu0 %1234 }
 0x1c7   : > { %v2479_v38 = vpop.permute.xlu2 %1244 }
 0x1c8   : > { %v1031_v8 = vpop.f32.mrf.mxu0 }
 0x1c9   : > { %v1051_v12 = vpop.f32.mrf.mxu1  ;;  %v1054_v10 = vadd.f32 %v1031_v8, %v967_v9 }
 0x1ca   : > { %v1055_v48 = vadd.f32 %v1051_v12, %v968_v11 }
 0x1cb   : > { %v1128_v16 = vadd.f32 %v1105_v15, %v1054_v10 }
 0x1cc   : > { %v1129_v17 = vadd.f32 %v1125_v13, %v1055_v48 }
 0x1cf   : > { %v1351_v49 = vpop.permute.xlu2 %1350 }
 0x1d0   : > { %v1192_v14 = vpop.f32.mrf.mxu0 }
 0x1d1   : > { %v1215_v18 = vadd.f32 %v1192_v14, %v1128_v16 }
 0x1d2   : > { %v1212_v19 = vpop.f32.mrf.mxu1 }
 0x1d3   : > { %v1217_v22 = vmax.f32 %v1215_v18, 0.0  ;;  %v1216_v23 = vadd.f32 %v1212_v19, %v1129_v17 }
 0x1d5   : > { %v1363_v0 = vrot.slane %v1217_v22, 4  ;;  %v1218_v24 = vmax.f32 %v1216_v23, 0.0  ;;  %1643 = vmatpush.msk.msra.mxu2 %vm1260_vm8, %v1217_v22 }
 0x1d6   : > { %1644 = vmatmul.msk.f32.vlgmr.msra.gmra.mxu2 %vm1247_vm9, %v1219_v4 }
 0x1d7   : > { %v1364_v26 = vrot.slane %v1218_v24, 4  ;;  %1648 = vmatpush.msk.msra.mxu3 %vm1260_vm8, %v1218_v24  ;;  %1661 = vmatpush.msk.msrb.mxu0 %vm1260_vm8, %v1363_v0 }
 0x1d8   : > { %1649 = vmatmul.msk.f32.vlgmr.msra.gmra.mxu3 %vm1247_vm9, %v1219_v4  ;;  %1662 = vmatmul.msk.f32.vlgmr.msrb.gmra.mxu0 %vm1247_vm9, %v1653_v25 }
 0x1d9   : > { %1666 = vmatpush.msk.msrb.mxu1 %vm1260_vm8, %v1364_v26  ;;  %v1356_v58 = vpop.permute.xlu0 %1355 }
 0x1da   : > { %1667 = vmatmul.msk.f32.vlgmr.msrb.gmra.mxu1 %vm1247_vm9, %v1653_v25 }
 0x1de   : > { %1645 = vmatmul.msk.f32.gmra.mxu2 %vm1247_vm9, %v1220_v29 }
 0x1e0   : > { %1650 = vmatmul.msk.f32.gmra.mxu3 %vm1247_vm9, %v1220_v29  ;;  %1663 = vmatmul.msk.f32.gmra.mxu0 %vm1247_vm9, %v1654_v30 }
 0x1e2   : > { %1668 = vmatmul.msk.f32.gmra.mxu1 %vm1247_vm9, %v1654_v30 }
 0x1e6   : > { %1646 = vmatmul.msk.f32.gmra.mxu2 %vm1247_vm9, %v1221_v32 }
 0x1e8   : > { %1651 = vmatmul.msk.f32.gmra.mxu3 %vm1247_vm9, %v1221_v32  ;;  %1664 = vmatmul.msk.f32.gmra.mxu0 %vm1247_vm9, %v1655_v33 }
 0x1ea   : > { %1669 = vmatmul.msk.f32.gmra.mxu1 %vm1247_vm9, %v1655_v33 }
 0x1ee   : > { %1647 = vmatmul.msk.f32.gmra.mxu2 %vm1247_vm9, %v1222_v34 }
 0x1f0   : > { %1652 = vmatmul.msk.f32.gmra.mxu3 %vm1247_vm9, %v1222_v34  ;;  %1665 = vmatmul.msk.f32.gmra.mxu0 %vm1247_vm9, %v1656_v35 }
 0x1f2   : > { %1670 = vmatmul.msk.f32.gmra.mxu1 %vm1247_vm9, %v1656_v35 }
 0x255   : > { %v1398_v40 = vpop.f32.mrf.mxu0 }
 0x256   : > { %v1399_v41 = vadd.f32 %v1398_v40, %v1346_v39 }
 0x257   : > { %v1427_v42 = vpop.f32.mrf.mxu1 }
 0x258   : > { %1439 = vst [vmem:[%s2482_s23] sm:$0xff] %v1399_v41  ;;  %v1428_v43 = vadd.f32 %v1427_v42, %v1346_v39 }
 0x259   : > { %v1284_v44 = vpop.f32.mrf.mxu2 }
 0x25a   : > { %1440 = vst [vmem:[%s2482_s23 + $0x8] sm:$0xff] %v1428_v43  ;;  %v1285_v46 = vadd.f32 %v1284_v44, %v1230_v36 }
 0x25b   : > { %v1313_v47 = vpop.f32.mrf.mxu3 }
 0x25c   : > { %1325 = vst [vmem:[%s2486_s29] sm:$0xff] %v1285_v46  ;;  %v1314_v50 = vadd.f32 %v1313_v47, %v1230_v36 }
 0x25d   : > { %v1401_v51 = vpop.f32.mrf.mxu0 }
 0x25e   : > { %1326 = vst [vmem:[%s2486_s29 + $0x8] sm:$0xff] %v1314_v50  ;;  %v1402_v52 = vadd.f32 %v1401_v51, %v1351_v49 }
 0x25f   : > { %v1430_v53 = vpop.f32.mrf.mxu1 }
 0x260   : > { %v1431_v54 = vadd.f32 %v1430_v53, %v1351_v49  ;;  %1441 = vst [vmem:[%s2482_s23 + $0x10] sm:$0xff] %v1402_v52 }
 0x261   : > { %v1287_v55 = vpop.f32.mrf.mxu2 }
 0x262   : > { %v1288_v56 = vadd.f32 %v1287_v55, %v1235_v45  ;;  %1442 = vst [vmem:[%s2482_s23 + $0x18] sm:$0xff] %v1431_v54 }
 0x263   : > { %v1316_v57 = vpop.f32.mrf.mxu3 }
 0x264   : > { %v1317_v59 = vadd.f32 %v1316_v57, %v1235_v45  ;;  %1327 = vst [vmem:[%s2486_s29 + $0x10] sm:$0xff] %v1288_v56 }
 0x265   : > { %v1404_v60 = vpop.f32.mrf.mxu0 }
 0x266   : > { %1328 = vst [vmem:[%s2486_s29 + $0x18] sm:$0xff] %v1317_v59  ;;  %v1405_v61 = vadd.f32 %v1404_v60, %v1356_v58 }
 0x267   : > { %v1433_v62 = vpop.f32.mrf.mxu1 }
 0x268   : > { %v1434_v63 = vadd.f32 %v1433_v62, %v1356_v58  ;;  %1443 = vst [vmem:[%s2482_s23 + $0x20] sm:$0xff] %v1405_v61 }
 0x269   : > { %v1290_v1 = vpop.f32.mrf.mxu2 }
 0x26a   : > { %v1291_v2 = vadd.f32 %v1290_v1, %v1240_v37  ;;  %1444 = vst [vmem:[%s2482_s23 + $0x28] sm:$0xff] %v1434_v63 }
 0x26b   : > { %v1319_v3 = vpop.f32.mrf.mxu3 }
 0x26c   : > { %1329 = vst [vmem:[%s2486_s29 + $0x20] sm:$0xff] %v1291_v2  ;;  %v1320_v5 = vadd.f32 %v1319_v3, %v1240_v37 }
 0x26d   : > { %v1407_v7 = vpop.f32.mrf.mxu0 }
 0x26e   : > { %1330 = vst [vmem:[%s2486_s29 + $0x28] sm:$0xff] %v1320_v5  ;;  %v1408_v8 = vadd.f32 %v1407_v7, %v1361_v6 }
 0x26f   : > { %v1436_v9 = vpop.f32.mrf.mxu1 }
 0x270   : > { %1445 = vst [vmem:[%s2482_s23 + $0x30] sm:$0xff] %v1408_v8  ;;  %v1437_v12 = vadd.f32 %v1436_v9, %v1361_v6 }
 0x271   : > { %v1293_v11 = vpop.f32.mrf.mxu2 }
 0x272   : > { %1446 = vst [vmem:[%s2482_s23 + $0x38] sm:$0xff] %v1437_v12  ;;  %v1294_v10 = vadd.f32 %v1293_v11, %v2479_v38 }
 0x273   : > { %v1322_v15 = vpop.f32.mrf.mxu3 }
 0x274   : > { %1984 = shalt.err (!%p1981_p8)
}
 0x275   : > { %s2081_s23 = smov 256   ;;  %s2575_s18 = smov 16   ;;  %1331 = vst [vmem:[%s2486_s29 + $0x30] sm:$0xff] %v1294_v10  ;;  %v1323_v48 = vadd.f32 %v1322_v15, %v2479_v38 }
 0x276   : > { %1691 = dma.vmem_to_hbm [thread:$0]  (%p2160_p5), %s2508_s15, 1024, %s1485_s28, %s1453_s9, %s2081_s23, %s2081_s23, %s2575_s18  }
 0x277   : > { %1332 = vst [vmem:[%s2486_s29 + $0x38] sm:$0xff] %v1323_v48  ;;  %s1448_s0 = scalar_lea.sflag [#allocation5], %s2477_s20  ;;  %s1999_s21 = sshra.s32 %s1468_s22, 4  ;;  %s2000_s21 = int_to_ptr.hbm [resolvable:$true] %s1999_s21 }
 0x278   : > { %s2001_s13 = scalar_lea.hbm %s2000_s21, 64  ;;  %s2005_s16 = scalar_lea.hbm %s2566_s6, 128 }
 0x279   : > { %p2002_p9 = scmp.ne.s32.totalorder %s2000_s21, %s2001_s13  ;;  %p2006_p12 = scmp.lt.s32.totalorder %s2000_s21, %s2566_s6 }
 0x27a   : > { %p2007_p13 = scmp.lt.s32.totalorder %s2005_s16, %s2001_s13 }
 0x27b   : > { %p2003_p10 = pnand %p2002_p9, %p2160_p5 }
 0x27c   : > { %p2008_p0 = por %p2007_p13, %p2006_p12 }
 0x27d   : > { %p2004_p11 = pneg %p2003_p10 }
 0x27f   : > { %p2009_p1 = pnand %p2008_p0, %p2004_p11 }
 0x281   : > { %2012 = shalt.err (!%p2009_p1)
}
 0x282   : > { %1690 = dma.vmem_to_hbm [thread:$0]  (%p2160_p5), %s1466_s19, 1024, %s1468_s22, %s1448_s0, %s2081_s23, %s2081_s23, %s2575_s18  }
 0x283 PF: > { %p1712_p2 = scmp.ge.s32.totalorder %s2059_s27, 2  ;;  %s1499_s20 = sand.u32 1, %s2047_s24  }
 0x284   : > { %s1500_s29 = scalar_lea.sflag [#allocation5], %s1499_s20 }
 0x285   : > { %p1702_p3 = pnand %p1712_p2, %p2164_p6 }
 0x287   : > { %p1703_p4 = pneg %p1702_p3 }
 0x289   : > { %2038 = dma.done.wait (%p1703_p4), %s1500_s29, 1024  }
 0x28a   : > { %2040 = vsyncadd (%p1703_p4), %s1500_s29, 4294966272  ;;  %s1510_s28 = scalar_lea.sflag [#allocation10], %s1499_s20 }
 0x28b   : > { %2042 = dma.done.wait (%p1703_p4), %s1510_s28, 1024  }
 0x28c   : > { %2044 = vsyncadd (%p1703_p4), %s1510_s28, 4294966272  ;;  %p23_p5 = scmp.ge.s32.totalorder %s2147_s30, 4   ;;  %s2576_s24 = smov %s2051_s25 }
 0x28d   : > { %s2577_s25 = smov %s2055_s26  ;;  %s2578_s26 = smov %s2158_s10 }
 0x28e   : > { %s2579_s27 = smov %s2147_s30  ;;  %25 = sbr.rel (!%p23_p5) target bundleno = 9 (0x9), region = 115 }
 0x293   :  { %1516 = vsyncpa [#allocation4], 1 }
 0x294   :  { %1518 = vsyncpa [#allocation4 + $0x1], 1 }
 0x295   :  { %1519 = vsyncpa [#allocation7], 1 }
 0x296   :  { %1520 = vsyncpa [#allocation5], 1 }
 0x297   :  { %1522 = vsyncpa [#allocation5 + $0x1], 1 }
 0x298   :  { %1523 = vsyncpa [#allocation10], 1 }
 0x299   :  { %1525 = vsyncpa [#allocation10 + $0x1], 1 }

</bundles_post_ra>
